<compile_context>
chip_gen: v5e
topology: v5e:2x2
jax: 0.10.0
libtpu: 0.0.40
codegen_flags: <defaults>
</compile_context>

<pallas_src>
import numpy as np

import jax
import jax.numpy as jnp
from jax import lax
from jax.experimental import pallas as pl
from jax.experimental.pallas import tpu as pltpu


def _round_up(x, m):
    return (x + m - 1) // m * m


def _choose_lane_tile(N, HW, target=512):
    """Largest image-aligned lane tile k*HW (k | N) that is a multiple of 128
    and <= target; else the smallest valid one; else the full fused axis."""
    best = None
    for k in range(1, N + 1):
        if N % k or (k * HW) % 128:
            continue
        lanes = k * HW
        if best is None or lanes <= target:
            best = lanes
    return best if best is not None else N * HW


def _tap_masks(H, W, lanes):
    """(8, lanes) f32 validity masks for the 8 non-center 3x3 taps.

    Mask is on the *output* pixel position: tap (sy, sx) contributes iff
    0 <= y+sy < H and 0 <= x+sx < W.  Periodic with period H*W, so a single
    block of masks is valid for every image fused into the lane axis and the
    in-kernel rolls cannot leak across image boundaries.
    """
    HW = H * W
    p = np.arange(lanes)
    within = p % HW
    yy = within // W
    xx = within % W
    rows = []
    for t in range(9):
        if t == 4:
            continue
        sy, sx = t // 3 - 1, t % 3 - 1
        m = np.ones(lanes, dtype=np.float32)
        if sy == -1:
            m *= (yy != 0)
        elif sy == 1:
            m *= (yy != H - 1)
        if sx == -1:
            m *= (xx != 0)
        elif sx == 1:
            m *= (xx != W - 1)
        rows.append(m.astype(np.float32))
    return jnp.asarray(np.stack(rows, axis=0))


def make_bottleneck_kernel(W, lanes, Cin, growth, growth_pad,
                           compute_dtype=jnp.float32):
    """Builds the per-lane-tile kernel (all shape constants closed over)."""

    def kernel(x_ref, s1_ref, b1_ref, w1_ref, b2_ref, w2_ref, m_ref, o_ref):
        # x_ref : (Cin, lanes)              channels-major slab, lane-dense
        # s1/b1 : (Cin, 1)                  folded BN1 scale/shift
        # w1_ref: (planes, Cin)             1x1 weight with BN2 scale folded in
        # b2_ref: (planes, 1)               BN2 shift
        # w2_ref: (9*growth_pad, planes)    3x3 weight, tap-major, row-padded
        # m_ref : (8, lanes)                precomputed tap boundary masks
        # o_ref : (Cin+growth, lanes)       concatenated output block
        x = x_ref[...].astype(jnp.float32)

        # Fused channel-concat: pass x straight through to the first Cin rows.
        o_ref[:Cin, :] = x.astype(o_ref.dtype)

        # BN1 + ReLU, then 1x1 conv (BN2 scale pre-folded into w1).
        a1 = jnp.maximum(x * s1_ref[...] + b1_ref[...], 0.0)        # (Cin, L)
        h1 = jnp.dot(w1_ref[...].astype(compute_dtype),
                     a1.astype(compute_dtype),
                     preferred_element_type=jnp.float32)            # (planes, L)

        # BN2 shift + ReLU.
        a2 = jnp.maximum(h1 + b2_ref[...], 0.0)                     # (planes, L)

        # 3x3 conv (pad=1): one big-N MXU pass gives every tap's per-pixel
        # contribution; taps are combined in registers with XLU rolls + VPU
        # masked adds (no VMEM accumulator, no misaligned RMW stores).
        h2 = jnp.dot(w2_ref[...].astype(compute_dtype),
                     a2.astype(compute_dtype),
                     preferred_element_type=jnp.float32)    # (9*growth_pad, L)

        gp = growth_pad
        acc = h2[4 * gp:5 * gp, :]            # center tap (sublane-aligned view)
        mi = 0
        for t in range(9):                     # statically unrolled, 8 taps
            if t == 4:
                continue
            sy, sx = t // 3 - 1, t % 3 - 1
            s = sy * W + sx                    # shift in flattened (y*W+x) space
            rolled = pltpu.roll(h2[t * gp:(t + 1) * gp, :],
                                shift=(-s) % lanes, axis=1)
            acc = acc + rolled * m_ref[mi:mi + 1, :]
            mi += 1

        o_ref[Cin:, :] = acc[:growth, :].astype(o_ref.dtype)

    return kernel


def bottleneck_forward(x_nchw, params, growth, *, target_lanes=512,
                       compute_dtype=jnp.float32):
    """Fused Bottleneck forward. Input/output NCHW; returns concat([x, new]).

    `growth` must be a static Python int (jit with static_argnums).
    compute_dtype=jnp.bfloat16 casts the MXU operands only (f32 accumulation),
    recommended on v6e/v7x when reduced precision is acceptable.
    """
    N, Cin, H, W = x_nchw.shape
    HW = H * W
    total = N * HW
    s1, b1, w1f, b2, w2p = (params["s1"], params["b1"], params["w1f"],
                            params["b2"], params["w2p"])
    planes = w1f.shape[0]
    growth_pad = w2p.shape[0] // 9
    Cout = Cin + growth

    lanes = _choose_lane_tile(N, HW, target_lanes)
    grid = (total // lanes,)
    masks = _tap_masks(H, W, lanes)

    # One-time relayout to channels-major (Cin, N*H*W): the lane axis is long
    # and image-aligned so all in-kernel vector work is full-width and aligned.
    x_cm = jnp.transpose(x_nchw.reshape(N, Cin, HW), (1, 0, 2)).reshape(
        Cin, total)

    out_cm = pl.pallas_call(
        make_bottleneck_kernel(W, lanes, Cin, growth, growth_pad,
                               compute_dtype),
        out_shape=jax.ShapeDtypeStruct((Cout, total), x_nchw.dtype),
        grid=grid,
        in_specs=[
            pl.BlockSpec((Cin, lanes), lambda i: (0, i)),
            pl.BlockSpec((Cin, 1), lambda i: (0, 0)),
            pl.BlockSpec((Cin, 1), lambda i: (0, 0)),
            pl.BlockSpec((planes, Cin), lambda i: (0, 0)),
            pl.BlockSpec((planes, 1), lambda i: (0, 0)),
            pl.BlockSpec((9 * growth_pad, planes), lambda i: (0, 0)),
            pl.BlockSpec((8, lanes), lambda i: (0, 0)),
        ],
        out_specs=pl.BlockSpec((Cout, lanes), lambda i: (0, i)),
        compiler_params=pltpu.CompilerParams(
            # Lane tiles are independent -> parallel (megacore sharding).
            dimension_semantics=("parallel",),
            # Per-step footprint is tiny; plenty of double-buffer headroom
            # under every generation's physical VMEM (incl. v7x's 64 MiB).
            vmem_limit_bytes=32 * 1024 * 1024,
        ),
    )(x_cm, s1, b1, w1f, b2, w2p, masks)

    return jnp.transpose(out_cm.reshape(Cout, N, HW), (1, 0, 2)).reshape(
        N, Cout, H, W)


def make_params(key, inplanes, expansion=4, growth_rate=12, eps=1e-5):
    """Deterministic synthetic parameters; BN folded to scale/shift, BN2 scale
    folded into the 1x1 conv weight, 3x3 weight laid out tap-major with
    per-tap rows padded to a sublane multiple."""
    planes = expansion * growth_rate
    growth_pad = _round_up(growth_rate, 8)
    ks = jax.random.split(key, 10)

    # BN1 (inference): gamma, beta, running_mean, running_var.
    g1 = jax.random.uniform(ks[0], (inplanes,), minval=0.5, maxval=1.5)
    be1 = 0.1 * jax.random.normal(ks[1], (inplanes,))
    rm1 = 0.1 * jax.random.normal(ks[2], (inplanes,))
    rv1 = jax.random.uniform(ks[3], (inplanes,), minval=0.5, maxval=1.5)
    s1 = g1 / jnp.sqrt(rv1 + eps)
    b1 = be1 - rm1 * s1

    # conv1: PyTorch weight (planes, inplanes, 1, 1).
    w1_oihw = jax.random.normal(ks[4], (planes, inplanes, 1, 1)) * jnp.sqrt(
        2.0 / inplanes)

    # BN2.
    g2 = jax.random.uniform(ks[5], (planes,), minval=0.5, maxval=1.5)
    be2 = 0.1 * jax.random.normal(ks[6], (planes,))
    rm2 = 0.1 * jax.random.normal(ks[7], (planes,))
    rv2 = jax.random.uniform(ks[8], (planes,), minval=0.5, maxval=1.5)
    s2 = g2 / jnp.sqrt(rv2 + eps)
    b2 = be2 - rm2 * s2

    # conv2: PyTorch weight (growth, planes, 3, 3) -> tap-major, rows padded to
    # growth_pad so every tap slice of the matmul result is sublane-aligned.
    w2_oihw = jax.random.normal(ks[9], (growth_rate, planes, 3, 3)) * jnp.sqrt(
        2.0 / (planes * 9))
    w2_t = jnp.transpose(w2_oihw, (2, 3, 0, 1)).reshape(9, growth_rate, planes)
    w2p = jnp.pad(w2_t, ((0, 0), (0, growth_pad - growth_rate), (0, 0)))
    w2p = w2p.reshape(9 * growth_pad, planes)

    # Fold BN2 scale into the 1x1 conv weight: relu((w1@a1)*s2 + b2)
    #                                       == relu((w1*s2)@a1 + b2).
    w1f = w1_oihw[:, :, 0, 0] * s2[:, None]

    kernel_params = dict(
        s1=s1.reshape(-1, 1).astype(jnp.float32),
        b1=b1.reshape(-1, 1).astype(jnp.float32),
        w1f=w1f.astype(jnp.float32),
        b2=b2.reshape(-1, 1).astype(jnp.float32),
        w2p=w2p.astype(jnp.float32),
    )
    raw = dict(g1=g1, be1=be1, rm1=rm1, rv1=rv1, w1_oihw=w1_oihw,
               g2=g2, be2=be2, rm2=rm2, rv2=rv2, w2_oihw=w2_oihw, eps=eps)
    return kernel_params, raw


def reference_forward(x_nchw, raw):
    """Pure-JAX (XLA) reference mirroring the PyTorch forward (eval BN)."""
    eps = raw["eps"]

    def bn(x, g, b, rm, rv):
        return ((x - rm[None, :, None, None]) /
                jnp.sqrt(rv[None, :, None, None] + eps)
                * g[None, :, None, None] + b[None, :, None, None])

    out = jnp.maximum(bn(x_nchw, raw["g1"], raw["be1"], raw["rm1"],
                         raw["rv1"]), 0.0)
    out = lax.conv_general_dilated(out, raw["w1_oihw"], (1, 1), "VALID",
                                   dimension_numbers=("NCHW", "OIHW", "NCHW"))
    out = jnp.maximum(bn(out, raw["g2"], raw["be2"], raw["rm2"],
                         raw["rv2"]), 0.0)
    out = lax.conv_general_dilated(out, raw["w2_oihw"], (1, 1),
                                   ((1, 1), (1, 1)),
                                   dimension_numbers=("NCHW", "OIHW", "NCHW"))
    return jnp.concatenate([x_nchw, out], axis=1)


if __name__ == "__main__":
    inplanes, expansion, growth_rate = 16, 4, 12
    N, H, W = 16, 8, 8   # fused lane tile: 8 images * 64 px = 512 lanes/step

    key = jax.random.PRNGKey(0)
    kx, kp = jax.random.split(key)
    x = jax.random.normal(kx, (N, inplanes, H, W), dtype=jnp.float32)  # NCHW

    params, raw = make_params(kp, inplanes, expansion, growth_rate)

    fwd = jax.jit(bottleneck_forward, static_argnums=(2,))
    out = jax.block_until_ready(fwd(x, params, growth_rate))

    assert out.shape == (N, inplanes + growth_rate, H, W), out.shape

    ref = jax.block_until_ready(reference_forward(x, raw))
    assert jnp.allclose(out, ref, atol=1e-3, rtol=1e-3), (
        float(jnp.max(jnp.abs(out - ref))))

    print("KERNEL_OK")
</pallas_src>

<mosaic_0001>
module attributes {stable_mosaic.version = 11 : i64} {
  func.func @kernel(%arg0: i32, %arg1: memref<16x512xf32, #tpu.memory_space<vmem>>, %arg2: memref<16x1xf32, #tpu.memory_space<vmem>>, %arg3: memref<16x1xf32, #tpu.memory_space<vmem>>, %arg4: memref<48x16xf32, #tpu.memory_space<vmem>>, %arg5: memref<48x1xf32, #tpu.memory_space<vmem>>, %arg6: memref<144x48xf32, #tpu.memory_space<vmem>>, %arg7: memref<8x512xf32, #tpu.memory_space<vmem>>, %arg8: memref<28x512xf32, #tpu.memory_space<vmem>>) attributes {dimension_semantics = [#tpu.dimension_semantics<parallel>], iteration_bounds = array<i64: 2>, scalar_prefetch = 0 : i64, scratch_operands = 0 : i64, tpu.core_type = #tpu.core_type<tc>, window_params = [{transform_indices = @transform_0, window_bounds = array<i64: 16, 512>}, {pipeline_mode = #tpu.pipeline_mode<synchronous>, transform_indices = @transform_1, window_bounds = array<i64: 16, 1>}, {pipeline_mode = #tpu.pipeline_mode<synchronous>, transform_indices = @transform_2, window_bounds = array<i64: 16, 1>}, {pipeline_mode = #tpu.pipeline_mode<synchronous>, transform_indices = @transform_3, window_bounds = array<i64: 48, 16>}, {pipeline_mode = #tpu.pipeline_mode<synchronous>, transform_indices = @transform_4, window_bounds = array<i64: 48, 1>}, {pipeline_mode = #tpu.pipeline_mode<synchronous>, transform_indices = @transform_5, window_bounds = array<i64: 144, 48>}, {pipeline_mode = #tpu.pipeline_mode<synchronous>, transform_indices = @transform_6, window_bounds = array<i64: 8, 512>}, {transform_indices = @transform_7, window_bounds = array<i64: 28, 512>}]} {
    %c0 = arith.constant 0 : index
    %c0_0 = arith.constant 0 : index
    %0 = vector.load %arg1[%c0, %c0_0] : memref<16x512xf32, #tpu.memory_space<vmem>>, vector<16x512xf32>
    %c0_1 = arith.constant 0 : index
    %c0_2 = arith.constant 0 : index
    %1 = vector.load %arg8[%c0_1, %c0_2] : memref<28x512xf32, #tpu.memory_space<vmem>>, vector<16x512xf32>
    tpu.vector_store %arg8[%c0_1, %c0_2], %0 {strides = array<i32>} : memref<28x512xf32, #tpu.memory_space<vmem>>, vector<16x512xf32>,
    %c0_3 = arith.constant 0 : index
    %c0_4 = arith.constant 0 : index
    %2 = vector.load %arg2[%c0_3, %c0_4] : memref<16x1xf32, #tpu.memory_space<vmem>>, vector<16x1xf32>
    %3 = vector.broadcast %2 : vector<16x1xf32> to vector<16x512xf32>
    %4 = arith.mulf %0, %3 : vector<16x512xf32>
    %c0_5 = arith.constant 0 : index
    %c0_6 = arith.constant 0 : index
    %5 = vector.load %arg3[%c0_5, %c0_6] : memref<16x1xf32, #tpu.memory_space<vmem>>, vector<16x1xf32>
    %6 = vector.broadcast %5 : vector<16x1xf32> to vector<16x512xf32>
    %7 = arith.addf %4, %6 : vector<16x512xf32>
    %cst = arith.constant 0.000000e+00 : f32
    %8 = vector.broadcast %cst : f32 to vector<16x512xf32>
    %9 = arith.maximumf %7, %8 : vector<16x512xf32>
    %c0_7 = arith.constant 0 : index
    %c0_8 = arith.constant 0 : index
    %10 = vector.load %arg4[%c0_7, %c0_8] : memref<48x16xf32, #tpu.memory_space<vmem>>, vector<48x16xf32>
    %cst_9 = arith.constant dense<0.000000e+00> : vector<48x512xf32>
    %11 = tpu.matmul %10, %9, %cst_9 {dimension_numbers = #tpu.dot_dimension_numbers<[1], [0], [0], [1], [0, 0, 1, 1], [], []>} : vector<48x16xf32>, vector<16x512xf32>, vector<48x512xf32> -> vector<48x512xf32>
    %c0_10 = arith.constant 0 : index
    %c0_11 = arith.constant 0 : index
    %12 = vector.load %arg5[%c0_10, %c0_11] : memref<48x1xf32, #tpu.memory_space<vmem>>, vector<48x1xf32>
    %13 = vector.broadcast %12 : vector<48x1xf32> to vector<48x512xf32>
    %14 = arith.addf %11, %13 : vector<48x512xf32>
    %cst_12 = arith.constant 0.000000e+00 : f32
    %15 = vector.broadcast %cst_12 : f32 to vector<48x512xf32>
    %16 = arith.maximumf %14, %15 : vector<48x512xf32>
    %c0_13 = arith.constant 0 : index
    %c0_14 = arith.constant 0 : index
    %17 = vector.load %arg6[%c0_13, %c0_14] : memref<144x48xf32, #tpu.memory_space<vmem>>, vector<144x48xf32>
    %cst_15 = arith.constant dense<0.000000e+00> : vector<144x512xf32>
    %18 = tpu.matmul %17, %16, %cst_15 {dimension_numbers = #tpu.dot_dimension_numbers<[1], [0], [0], [1], [0, 0, 1, 1], [], []>} : vector<144x48xf32>, vector<48x512xf32>, vector<144x512xf32> -> vector<144x512xf32>
    %19 = vector.extract_strided_slice %18 {offsets = [64, 0], sizes = [16, 512], strides = [1, 1]} : vector<144x512xf32> to vector<16x512xf32>
    %20 = vector.extract_strided_slice %18 {offsets = [0, 0], sizes = [16, 512], strides = [1, 1]} : vector<144x512xf32> to vector<16x512xf32>
    %c9_i32 = arith.constant 9 : i32
    %21 = tpu.dynamic_rotate %20 by %c9_i32 dim 1 : vector<16x512xf32>, i32 -> vector<16x512xf32>
    %c0_16 = arith.constant 0 : index
    %c0_17 = arith.constant 0 : index
    %22 = vector.load %arg7[%c0_16, %c0_17] : memref<8x512xf32, #tpu.memory_space<vmem>>, vector<1x512xf32>
    %23 = vector.broadcast %22 : vector<1x512xf32> to vector<16x512xf32>
    %24 = arith.mulf %21, %23 : vector<16x512xf32>
    %25 = arith.addf %19, %24 : vector<16x512xf32>
    %26 = vector.extract_strided_slice %18 {offsets = [16, 0], sizes = [16, 512], strides = [1, 1]} : vector<144x512xf32> to vector<16x512xf32>
    %c8_i32 = arith.constant 8 : i32
    %27 = tpu.dynamic_rotate %26 by %c8_i32 dim 1 : vector<16x512xf32>, i32 -> vector<16x512xf32>
    %c1 = arith.constant 1 : index
    %c0_18 = arith.constant 0 : index
    %28 = vector.load %arg7[%c1, %c0_18] : memref<8x512xf32, #tpu.memory_space<vmem>>, vector<1x512xf32>
    %29 = vector.broadcast %28 : vector<1x512xf32> to vector<16x512xf32>
    %30 = arith.mulf %27, %29 : vector<16x512xf32>
    %31 = arith.addf %25, %30 : vector<16x512xf32>
    %32 = vector.extract_strided_slice %18 {offsets = [32, 0], sizes = [16, 512], strides = [1, 1]} : vector<144x512xf32> to vector<16x512xf32>
    %c7_i32 = arith.constant 7 : i32
    %33 = tpu.dynamic_rotate %32 by %c7_i32 dim 1 : vector<16x512xf32>, i32 -> vector<16x512xf32>
    %c2 = arith.constant 2 : index
    %c0_19 = arith.constant 0 : index
    %34 = vector.load %arg7[%c2, %c0_19] : memref<8x512xf32, #tpu.memory_space<vmem>>, vector<1x512xf32>
    %35 = vector.broadcast %34 : vector<1x512xf32> to vector<16x512xf32>
    %36 = arith.mulf %33, %35 : vector<16x512xf32>
    %37 = arith.addf %31, %36 : vector<16x512xf32>
    %38 = vector.extract_strided_slice %18 {offsets = [48, 0], sizes = [16, 512], strides = [1, 1]} : vector<144x512xf32> to vector<16x512xf32>
    %c1_i32 = arith.constant 1 : i32
    %39 = tpu.dynamic_rotate %38 by %c1_i32 dim 1 : vector<16x512xf32>, i32 -> vector<16x512xf32>
    %c3 = arith.constant 3 : index
    %c0_20 = arith.constant 0 : index
    %40 = vector.load %arg7[%c3, %c0_20] : memref<8x512xf32, #tpu.memory_space<vmem>>, vector<1x512xf32>
    %41 = vector.broadcast %40 : vector<1x512xf32> to vector<16x512xf32>
    %42 = arith.mulf %39, %41 : vector<16x512xf32>
    %43 = arith.addf %37, %42 : vector<16x512xf32>
    %44 = vector.extract_strided_slice %18 {offsets = [80, 0], sizes = [16, 512], strides = [1, 1]} : vector<144x512xf32> to vector<16x512xf32>
    %c511_i32 = arith.constant 511 : i32
    %45 = tpu.dynamic_rotate %44 by %c511_i32 dim 1 : vector<16x512xf32>, i32 -> vector<16x512xf32>
    %c4 = arith.constant 4 : index
    %c0_21 = arith.constant 0 : index
    %46 = vector.load %arg7[%c4, %c0_21] : memref<8x512xf32, #tpu.memory_space<vmem>>, vector<1x512xf32>
    %47 = vector.broadcast %46 : vector<1x512xf32> to vector<16x512xf32>
    %48 = arith.mulf %45, %47 : vector<16x512xf32>
    %49 = arith.addf %43, %48 : vector<16x512xf32>
    %50 = vector.extract_strided_slice %18 {offsets = [96, 0], sizes = [16, 512], strides = [1, 1]} : vector<144x512xf32> to vector<16x512xf32>
    %c505_i32 = arith.constant 505 : i32
    %51 = tpu.dynamic_rotate %50 by %c505_i32 dim 1 : vector<16x512xf32>, i32 -> vector<16x512xf32>
    %c5 = arith.constant 5 : index
    %c0_22 = arith.constant 0 : index
    %52 = vector.load %arg7[%c5, %c0_22] : memref<8x512xf32, #tpu.memory_space<vmem>>, vector<1x512xf32>
    %53 = vector.broadcast %52 : vector<1x512xf32> to vector<16x512xf32>
    %54 = arith.mulf %51, %53 : vector<16x512xf32>
    %55 = arith.addf %49, %54 : vector<16x512xf32>
    %56 = vector.extract_strided_slice %18 {offsets = [112, 0], sizes = [16, 512], strides = [1, 1]} : vector<144x512xf32> to vector<16x512xf32>
    %c504_i32 = arith.constant 504 : i32
    %57 = tpu.dynamic_rotate %56 by %c504_i32 dim 1 : vector<16x512xf32>, i32 -> vector<16x512xf32>
    %c6 = arith.constant 6 : index
    %c0_23 = arith.constant 0 : index
    %58 = vector.load %arg7[%c6, %c0_23] : memref<8x512xf32, #tpu.memory_space<vmem>>, vector<1x512xf32>
    %59 = vector.broadcast %58 : vector<1x512xf32> to vector<16x512xf32>
    %60 = arith.mulf %57, %59 : vector<16x512xf32>
    %61 = arith.addf %55, %60 : vector<16x512xf32>
    %62 = vector.extract_strided_slice %18 {offsets = [128, 0], sizes = [16, 512], strides = [1, 1]} : vector<144x512xf32> to vector<16x512xf32>
    %c503_i32 = arith.constant 503 : i32
    %63 = tpu.dynamic_rotate %62 by %c503_i32 dim 1 : vector<16x512xf32>, i32 -> vector<16x512xf32>
    %c7 = arith.constant 7 : index
    %c0_24 = arith.constant 0 : index
    %64 = vector.load %arg7[%c7, %c0_24] : memref<8x512xf32, #tpu.memory_space<vmem>>, vector<1x512xf32>
    %65 = vector.broadcast %64 : vector<1x512xf32> to vector<16x512xf32>
    %66 = arith.mulf %63, %65 : vector<16x512xf32>
    %67 = arith.addf %61, %66 : vector<16x512xf32>
    %68 = vector.extract_strided_slice %67 {offsets = [0, 0], sizes = [12, 512], strides = [1, 1]} : vector<16x512xf32> to vector<12x512xf32>
    %c16 = arith.constant 16 : index
    %c0_25 = arith.constant 0 : index
    %69 = vector.load %arg8[%c16, %c0_25] : memref<28x512xf32, #tpu.memory_space<vmem>>, vector<12x512xf32>
    tpu.vector_store %arg8[%c16, %c0_25], %68 {strides = array<i32>} : memref<28x512xf32, #tpu.memory_space<vmem>>, vector<12x512xf32>,
    return
  }
  func.func @transform_0(%arg0: i32) -> (i32, i32) {
    %c0_i32 = arith.constant 0 : i32
    %c0_i32_0 = arith.constant 0 : i32
    return %c0_i32, %arg0 : i32, i32
  }
  func.func @transform_1(%arg0: i32) -> (i32, i32) {
    %c0_i32 = arith.constant 0 : i32
    %c0_i32_0 = arith.constant 0 : i32
    %c0_i32_1 = arith.constant 0 : i32
    return %c0_i32, %c0_i32_0 : i32, i32
  }
  func.func @transform_2(%arg0: i32) -> (i32, i32) {
    %c0_i32 = arith.constant 0 : i32
    %c0_i32_0 = arith.constant 0 : i32
    %c0_i32_1 = arith.constant 0 : i32
    return %c0_i32, %c0_i32_0 : i32, i32
  }
  func.func @transform_3(%arg0: i32) -> (i32, i32) {
    %c0_i32 = arith.constant 0 : i32
    %c0_i32_0 = arith.constant 0 : i32
    %c0_i32_1 = arith.constant 0 : i32
    return %c0_i32, %c0_i32_0 : i32, i32
  }
  func.func @transform_4(%arg0: i32) -> (i32, i32) {
    %c0_i32 = arith.constant 0 : i32
    %c0_i32_0 = arith.constant 0 : i32
    %c0_i32_1 = arith.constant 0 : i32
    return %c0_i32, %c0_i32_0 : i32, i32
  }
  func.func @transform_5(%arg0: i32) -> (i32, i32) {
    %c0_i32 = arith.constant 0 : i32
    %c0_i32_0 = arith.constant 0 : i32
    %c0_i32_1 = arith.constant 0 : i32
    return %c0_i32, %c0_i32_0 : i32, i32
  }
  func.func @transform_6(%arg0: i32) -> (i32, i32) {
    %c0_i32 = arith.constant 0 : i32
    %c0_i32_0 = arith.constant 0 : i32
    %c0_i32_1 = arith.constant 0 : i32
    return %c0_i32, %c0_i32_0 : i32, i32
  }
  func.func @transform_7(%arg0: i32) -> (i32, i32) {
    %c0_i32 = arith.constant 0 : i32
    %c0_i32_0 = arith.constant 0 : i32
    return %c0_i32, %arg0 : i32, i32
  }
}

</mosaic_0001>

<bundles_post_ra>
// kernel: bottleneck_forward.1
= control target key start
LH: loop header
LB: loop body
LE: loop exit
PB: predicated region body
PF: predicated region fallthrough
CT: control target
= control target key end

     0   :  { %s1722_s24 = smov 0   ;;  %s1724_s25 = smov 0   ;;  %s2415_s0 = inlined_call_operand.vmem [shape: f32[16,1024], index: 0, kind: input, shape index: {}]   ;;  %s2416_s1 = inlined_call_operand.vmem [shape: f32[16,1], index: 1, kind: input, shape index: {}]   ;;  %s2417_s2 = inlined_call_operand.vmem [shape: f32[16,1], index: 2, kind: input, shape index: {}]   ;;  %s2418_s3 = inlined_call_operand.vmem [shape: f32[48,16], index: 3, kind: input, shape index: {}]   ;;  %s2419_s4 = inlined_call_operand.vmem [shape: f32[48,1], index: 4, kind: input, shape index: {}]   ;;  %s2420_s5 = inlined_call_operand.vmem [shape: f32[144,48], index: 5, kind: input, shape index: {}]   ;;  %s2421_s6 = inlined_call_operand.vmem [shape: f32[8,512], index: 6, kind: input, shape index: {}]   ;;  %s2422_s7 = inlined_call_operand.vmem [shape: f32[28,1024], index: 7, kind: output, shape index: {}]  }
   0x1   :  { %s1726_s26 = smov 0  }
   0x2 LB: > { %s1493_s27 = sadd.s32 4294967295, %s1671_s26   ;;  %s1739_s28 = sadd.s32 1, %s1671_s26   ;;  %s1671_s26 = sphi %s1726_s26, %s2426_s26   ;;  %s1667_s25 = sphi %s1724_s25, %s2425_s25   ;;  %s1663_s24 = sphi %s1722_s24, %s2424_s24  }
   0x3   : > { %s21_s29 = ssub.s32 %s1671_s26, %s1739_s28  ;;  %s24_s30 = sadd.s32 1, %s1667_s25 }
   0x4   : > { %p22_p0 = scmp.eq.s32.totalorder %s21_s29, 0  ;;  %p31_p1 = scmp.ne.s32.totalorder %s1667_s25, %s1663_s24 }
   0x5   : > { %p32_p2 = scmp.eq.s32.totalorder %s1671_s26, 0  ;;  %p187_p3 = scmp.eq.s32.totalorder %s1493_s27, 1 }
   0x6   : > { %s1750_s8 = scalar_select %p22_p0, %s1667_s25, %s24_s30  }
   0x7   : > { %p33_p4 = por %p32_p2, %p31_p1  ;;  %p1752_p5 = por %p187_p3, %p31_p1 }
   0x8   : > { %p1496_p6 = scmp.ge.s32.totalorder %s1671_s26, 2 }
   0xa   : > { %227 = sbr.rel (%p1496_p6) target bundleno = 27 (0x1b), region = 40 }
   0xf   : > { %230 = sbr.rel (!%p33_p4) target bundleno = 27 (0x1b), region = 44  ;;  %s232_s10 = sand.u32 (%p33_p4), 1, %s1667_s25  }
  0x10   : > { %s1611_s11 = sshll.u32 (%p33_p4), %s1671_s26, 5  ;;  %s1497_s12 = sshll.u32 (%p33_p4), %s232_s10, 6 }
  0x11   : > { %s237_s15 = scalar_lea.vmem (%p33_p4), %s2415_s0, %s1611_s11  ;;  %s234_s16 = scalar_lea.vmem (%p33_p4), [#allocation2], %s1497_s12 }
  0x12   : > { %v250_v0 = vld [vmem:[%s237_s15] sm:$0xff] (%p33_p4)  ;;  %v252_v1 = vld [vmem:[%s237_s15 + $0x8] sm:$0xff] (%p33_p4)  ;;  %v254_v2 = vld [vmem:[%s237_s15 + $0x10] sm:$0xff] (%p33_p4) }
  0x13   : > { %251 = vst [vmem:[%s234_s16] sm:$0xff] (%p33_p4), %v250_v0  ;;  %v256_v3 = vld [vmem:[%s237_s15 + $0x18] sm:$0xff] (%p33_p4)  ;;  %v258_v4 = vld [vmem:[%s237_s15 + $0x40] sm:$0xff] (%p33_p4)  ;;  %v260_v5 = vld [vmem:[%s237_s15 + $0x48] sm:$0xff] (%p33_p4) }
  0x14   : > { %253 = vst [vmem:[%s234_s16 + $0x8] sm:$0xff] %v252_v1  ;;  %v262_v6 = vld [vmem:[%s237_s15 + $0x50] sm:$0xff]  ;;  %v264_v7 = vld [vmem:[%s237_s15 + $0x58] sm:$0xff] }
  0x15   : > { %255 = vst [vmem:[%s234_s16 + $0x10] sm:$0xff] %v254_v2 }
  0x16   : > { %257 = vst [vmem:[%s234_s16 + $0x18] sm:$0xff] %v256_v3 }
  0x17   : > { %259 = vst [vmem:[%s234_s16 + $0x20] sm:$0xff] %v258_v4 }
  0x18   : > { %261 = vst [vmem:[%s234_s16 + $0x28] sm:$0xff] %v260_v5 }
  0x19   : > { %263 = vst [vmem:[%s234_s16 + $0x30] sm:$0xff] %v262_v6 }
  0x1a   : > { %265 = vst [vmem:[%s234_s16 + $0x38] sm:$0xff] %v264_v7 }
  0x1b PF: > { %p1500_p7 = scmp.ge.s32.totalorder %s1671_s26, 1  ;;  %p270_p8 = scmp.lt.s32.totalorder %s1671_s26, 3 }
  0x1d   : > { %p271_p9 = pnand %p1500_p7, %p270_p8 }
  0x1e   : > { %s277_s15 = sand.u32 (!%p271_p9), 1, %s1663_s24   ;;  %s1674_s23 = smov (!%p271_p9), 9  }
  0x1f   : > { %274 = sbr.rel (%p271_p9) target bundleno = 777 (0x309), region = 67  ;;  %s1501_s16 = sshll.u32 (!%p271_p9), %s277_s15, 6 }
  0x20   : > { %s1502_s17 = sshll.u32 (!%p271_p9), %s277_s15, 7  ;;  %s279_s18 = scalar_lea.vmem (!%p271_p9), [#allocation2], %s1501_s16 }
  0x21   : > { %s1786_s19 = scalar_lea.vmem (!%p271_p9), [#allocation3], %s1502_s17  ;;  %s1675_s10 = smov (!%p271_p9), 8  }
  0x22   : > { %s1676_s11 = smov (!%p271_p9), 7   ;;  %s1677_s12 = smov (!%p271_p9), 1  }
  0x23   : > { %s1678_s13 = smov (!%p271_p9), 127   ;;  %s1679_s14 = smov (!%p271_p9), 121  }
  0x24   : > { %v346_v8 = vld [vmem:[%s2417_s2 + $0x8] sm:$0xff]  ;;  %v1673_v10 = vmov 0   ;;  %v345_v11 = vld [vmem:[%s2417_s2] sm:$0xff]  ;;  %v381_v13 = vld [vmem:[%s2419_s4 + $0x10] sm:$0xff]  ;;  %vm415_vm0 = vcmask 130048   ;;  %vm616_vm1 = vcmask 392192  }
  0x25   : > { %v326_v9 = vld [vmem:[%s2416_s1 + $0x8] sm:$0xff]  ;;  %1647 = vset.pattern.permute.xlu1 %v1673_v10  ;;  %1646 = vset.pattern.permute.xlu0 %v1673_v10  ;;  %v325_v12 = vld [vmem:[%s2416_s1] sm:$0xff]  ;;  %v382_v14 = vld [vmem:[%s2419_s4 + $0x18] sm:$0xff]  ;;  %s1680_s17 = smov 120   ;;  %s1681_s20 = smov 119  }
  0x26   : > { %354 = vperm.xlu1 %1647, %v346_v8   ;;  %334 = vperm.xlu0 %1646, %v326_v9   ;;  %v379_v15 = vld [vmem:[%s2419_s4] sm:$0xff]  ;;  %v314_v17 = vld [vmem:[%s279_s18 + $0x28] sm:$0xff]  ;;  %v315_v18 = vld [vmem:[%s279_s18 + $0x30] sm:$0xff] }
  0x27   : > { %1648 = vset.pattern.permute.xlu2 %v1673_v10  ;;  %v313_v16 = vld [vmem:[%s279_s18 + $0x20] sm:$0xff]  ;;  %322 = vst [vmem:[%s1786_s19 + $0x28] sm:$0xff] %v314_v17  ;;  %v316_v19 = vld [vmem:[%s279_s18 + $0x38] sm:$0xff]  ;;  %v310_v21 = vld [vmem:[%s279_s18 + $0x8] sm:$0xff] }
  0x28   : > { %321 = vst [vmem:[%s1786_s19 + $0x20] sm:$0xff] %v313_v16  ;;  %v309_v20 = vld [vmem:[%s279_s18] sm:$0xff]  ;;  %v311_v22 = vld [vmem:[%s279_s18 + $0x10] sm:$0xff]  ;;  %v312_v23 = vld [vmem:[%s279_s18 + $0x18] sm:$0xff] }
  0x29   : > { %323 = vst [vmem:[%s1786_s19 + $0x30] sm:$0xff] %v315_v18  ;;  %v384_v44 = vld [vmem:[%s2419_s4 + $0x28] sm:$0xff]  ;;  %v373_v53 = vld [vmem:[%s2418_s3] sm:$0xff]  ;;  %v375_v57 = vld [vmem:[%s2418_s3 + $0x10] sm:$0xff] }
  0x2a   : > { %324 = vst [vmem:[%s1786_s19 + $0x38] sm:$0xff] %v316_v19  ;;  %412 = vperm.xlu2 %1648, %v384_v44   ;;  %v383_v54 = vld [vmem:[%s2419_s4 + $0x20] sm:$0xff]  ;;  %v374_v55 = vld [vmem:[%s2418_s3 + $0x8] sm:$0xff]  ;;  %v376_v58 = vld [vmem:[%s2418_s3 + $0x18] sm:$0xff] }
  0x2b   : > { %317 = vst [vmem:[%s1786_s19] sm:$0xff] %v309_v20  ;;  %v380_v56 = vld [vmem:[%s2419_s4 + $0x8] sm:$0xff]  ;;  %v377_v59 = vld [vmem:[%s2418_s3 + $0x20] sm:$0xff] }
  0x2c   : > { %318 = vst [vmem:[%s1786_s19 + $0x8] sm:$0xff] %v310_v21  ;;  %v378_v60 = vld [vmem:[%s2418_s3 + $0x28] sm:$0xff] }
  0x2d   : > { %319 = vst [vmem:[%s1786_s19 + $0x10] sm:$0xff] %v311_v22 }
  0x2e   : > { %349 = vperm.xlu1 %1647, %v345_v11   ;;  %329 = vperm.xlu0 %1646, %v325_v12   ;;  %320 = vst [vmem:[%s1786_s19 + $0x18] sm:$0xff] %v312_v23 }
  0x32   : > { %407 = vperm.xlu2 %1648, %v383_v54  }
  0x36   : > { %397 = vperm.xlu1 %1647, %v381_v13   ;;  %402 = vperm.xlu0 %1646, %v382_v14  }
  0x3a   : > { %392 = vperm.xlu2 %1648, %v380_v56  }
  0x3e   : > { %387 = vperm.xlu0 %1646, %v379_v15  }
  0x84   : > { %v413_v7 = vpop.permute.xlu2 %412 }
  0x98   : > { %v355_v24 = vpop.permute.xlu1 %354  ;;  %v335_v25 = vpop.permute.xlu0 %334 }
  0x99   : > { %v341_v26 = vmul.f32 %v335_v25, %v313_v16  ;;  %v342_v27 = vmul.f32 %v335_v25, %v314_v17  ;;  %v343_v28 = vmul.f32 %v335_v25, %v315_v18  ;;  %v344_v29 = vmul.f32 %v335_v25, %v316_v19  ;;  %v408_v16 = vpop.permute.xlu2 %407 }
  0x9b   : > { %v361_v30 = vadd.f32 %v355_v24, %v341_v26  ;;  %v362_v31 = vadd.f32 %v355_v24, %v342_v27  ;;  %v363_v32 = vadd.f32 %v355_v24, %v343_v28  ;;  %v364_v33 = vadd.f32 %v355_v24, %v344_v29 }
  0x9d   : > { %v369_v34 = vmax.f32 %v361_v30, 0.0  ;;  %v370_v35 = vmax.f32 %v362_v31, 0.0  ;;  %v371_v36 = vmax.f32 %v363_v32, 0.0  ;;  %v372_v37 = vmax.f32 %v364_v33, 0.0 }
  0x9f   : > { %448 = vmatpush.msra.mxu0 %v369_v34  ;;  %483 = vmatpush.msra.mxu1 %v370_v35 }
  0xa0   : > { %518 = vmatpush.msra.mxu2 %v371_v36  ;;  %553 = vmatpush.msra.mxu3 %v372_v37  ;;  %v330_v38 = vpop.permute.xlu0 %329  ;;  %v350_v43 = vpop.permute.xlu1 %349 }
  0xa1   : > { %v337_v39 = vmul.f32 %v330_v38, %v309_v20  ;;  %v338_v40 = vmul.f32 %v330_v38, %v310_v21  ;;  %v339_v41 = vmul.f32 %v330_v38, %v311_v22  ;;  %v340_v42 = vmul.f32 %v330_v38, %v312_v23  ;;  %v393_v31 = vpop.permute.xlu2 %392 }
  0xa3   : > { %v357_v45 = vadd.f32 %v350_v43, %v337_v39  ;;  %v358_v46 = vadd.f32 %v350_v43, %v338_v40  ;;  %v359_v47 = vadd.f32 %v350_v43, %v339_v41  ;;  %v360_v48 = vadd.f32 %v350_v43, %v340_v42 }
  0xa5   : > { %v365_v49 = vmax.f32 %v357_v45, 0.0  ;;  %v366_v50 = vmax.f32 %v358_v46, 0.0  ;;  %v367_v51 = vmax.f32 %v359_v47, 0.0  ;;  %v368_v52 = vmax.f32 %v360_v48, 0.0 }
  0xa7   : > { %449 = vmatpush.msra.mxu0 %v365_v49  ;;  %484 = vmatpush.msra.mxu1 %v366_v50 }
  0xa8   : > { %519 = vmatpush.msra.mxu2 %v367_v51  ;;  %554 = vmatpush.msra.mxu3 %v368_v52  ;;  %v403_v17 = vpop.permute.xlu0 %402  ;;  %v398_v30 = vpop.permute.xlu1 %397 }
  0xa9   : > { %1503 = vmatmul.msk.f32.vlgmr.msra.gmra.mxu0 %vm415_vm0, %v373_v53  ;;  %1509 = vmatmul.msk.f32.vlgmr.msra.gmra.mxu1 %vm415_vm0, %v373_v53 }
  0xaa   : > { %1515 = vmatmul.msk.f32.vlgmr.msra.gmra.mxu2 %vm415_vm0, %v373_v53  ;;  %1521 = vmatmul.msk.f32.vlgmr.msra.gmra.mxu3 %vm415_vm0, %v373_v53 }
  0xb0   : > { %v388_v42 = vpop.permute.xlu0 %387 }
  0xb1   : > { %1504 = vmatmul.msk.f32.gmra.mxu0 %vm415_vm0, %v374_v55  ;;  %1510 = vmatmul.msk.f32.gmra.mxu1 %vm415_vm0, %v374_v55 }
  0xb2   : > { %1516 = vmatmul.msk.f32.gmra.mxu2 %vm415_vm0, %v374_v55  ;;  %1522 = vmatmul.msk.f32.gmra.mxu3 %vm415_vm0, %v374_v55 }
  0xb9   : > { %1505 = vmatmul.msk.f32.gmra.mxu0 %vm415_vm0, %v375_v57  ;;  %1511 = vmatmul.msk.f32.gmra.mxu1 %vm415_vm0, %v375_v57 }
  0xba   : > { %1517 = vmatmul.msk.f32.gmra.mxu2 %vm415_vm0, %v375_v57  ;;  %1523 = vmatmul.msk.f32.gmra.mxu3 %vm415_vm0, %v375_v57 }
  0xc1   : > { %1506 = vmatmul.msk.f32.gmra.mxu0 %vm415_vm0, %v376_v58  ;;  %1512 = vmatmul.msk.f32.gmra.mxu1 %vm415_vm0, %v376_v58 }
  0xc2   : > { %1518 = vmatmul.msk.f32.gmra.mxu2 %vm415_vm0, %v376_v58  ;;  %1524 = vmatmul.msk.f32.gmra.mxu3 %vm415_vm0, %v376_v58 }
  0xc9   : > { %1507 = vmatmul.msk.f32.gmra.mxu0 %vm415_vm0, %v377_v59  ;;  %1513 = vmatmul.msk.f32.gmra.mxu1 %vm415_vm0, %v377_v59 }
  0xca   : > { %1519 = vmatmul.msk.f32.gmra.mxu2 %vm415_vm0, %v377_v59  ;;  %1525 = vmatmul.msk.f32.gmra.mxu3 %vm415_vm0, %v377_v59 }
  0xd1   : > { %1508 = vmatmul.msk.f32.gmra.mxu0 %vm415_vm0, %v378_v60  ;;  %1514 = vmatmul.msk.f32.gmra.mxu1 %vm415_vm0, %v378_v60 }
  0xd2   : > { %1520 = vmatmul.msk.f32.gmra.mxu2 %vm415_vm0, %v378_v60  ;;  %1526 = vmatmul.msk.f32.gmra.mxu3 %vm415_vm0, %v378_v60 }
 0x126   : > { %v451_v61 = vpop.f32.mrf.mxu0  ;;  %v486_v62 = vpop.f32.mrf.mxu1 }
 0x127   : > { %v452_v47 = vadd.f32 %v451_v61, %v388_v42  ;;  %v487_v48 = vadd.f32 %v486_v62, %v388_v42 }
 0x129   : > { %v574_v61 = vmax.f32 %v452_v47, 0.0  ;;  %v575_v62 = vmax.f32 %v487_v48, 0.0 }
 0x12d   : > { %v1847_v63 = vpop.f32.mrf.mxu2  ;;  %v1849_v0 = vpop.f32.mrf.mxu3 }
 0x12e   : > { %v454_v1 = vpop.f32.mrf.mxu0  ;;  %v489_v2 = vpop.f32.mrf.mxu1 }
 0x12f   : > { %v455_v36 = vadd.f32 %v454_v1, %v393_v31  ;;  %v490_v37 = vadd.f32 %v489_v2, %v393_v31 }
 0x131   : > { %v578_v55 = vmax.f32 %v455_v36, 0.0  ;;  %v579_v56 = vmax.f32 %v490_v37, 0.0 }
 0x135   : > { %v1851_v3 = vpop.f32.mrf.mxu2  ;;  %v1853_v4 = vpop.f32.mrf.mxu3 }
 0x136   : > { %v457_v5 = vpop.f32.mrf.mxu0  ;;  %v492_v6 = vpop.f32.mrf.mxu1  ;;  %v525_v1 = vadd.f32 %v1851_v3, %v393_v31  ;;  %v560_v2 = vadd.f32 %v1853_v4, %v393_v31 }
 0x137   : > { %v458_v32 = vadd.f32 %v457_v5, %v398_v30  ;;  %v493_v33 = vadd.f32 %v492_v6, %v398_v30 }
 0x138   : > { %v580_v4 = vmax.f32 %v525_v1, 0.0 }
 0x139   : > { %v582_v49 = vmax.f32 %v458_v32, 0.0  ;;  %v583_v50 = vmax.f32 %v493_v33, 0.0  ;;  %v615_v32 = vld [vmem:[%s2420_s5 + $0x88] sm:$0xff] }
 0x13d   : > { %v527_v8 = vpop.f32.mrf.mxu2  ;;  %v562_v9 = vpop.f32.mrf.mxu3 }
 0x13e   : > { %v460_v10 = vpop.f32.mrf.mxu0  ;;  %v495_v11 = vpop.f32.mrf.mxu1  ;;  %v528_v57 = vadd.f32 %v527_v8, %v398_v30  ;;  %v563_v58 = vadd.f32 %v562_v9, %v398_v30  ;;  %v522_v8 = vadd.f32 %v1847_v63, %v388_v42  ;;  %v557_v9 = vadd.f32 %v1849_v0, %v388_v42  ;;  %v599_v63 = vld [vmem:[%s2420_s5 + $0x8] sm:$0xff]  ;;  %v600_v0 = vld [vmem:[%s2420_s5 + $0x10] sm:$0xff] }
 0x13f   : > { %v461_v26 = vadd.f32 %v460_v10, %v403_v17  ;;  %v496_v27 = vadd.f32 %v495_v11, %v403_v17  ;;  %v581_v11 = vmax.f32 %v560_v2, 0.0 }
 0x140   : > { %v584_v3 = vmax.f32 %v528_v57, 0.0  ;;  %v585_v10 = vmax.f32 %v563_v58, 0.0 }
 0x141   : > { %v586_v38 = vmax.f32 %v461_v26, 0.0  ;;  %v587_v39 = vmax.f32 %v496_v27, 0.0  ;;  %v613_v26 = vld [vmem:[%s2420_s5 + $0x78] sm:$0xff] }
 0x145   : > { %v530_v12 = vpop.f32.mrf.mxu2  ;;  %v565_v13 = vpop.f32.mrf.mxu3 }
 0x146   : > { %v463_v14 = vpop.f32.mrf.mxu0  ;;  %v498_v15 = vpop.f32.mrf.mxu1  ;;  %v531_v51 = vadd.f32 %v530_v12, %v403_v17  ;;  %v566_v52 = vadd.f32 %v565_v13, %v403_v17  ;;  %v576_v12 = vmax.f32 %v522_v8, 0.0  ;;  %v577_v13 = vmax.f32 %v557_v9, 0.0  ;;  %v604_v17 = vld [vmem:[%s2420_s5 + $0x30] sm:$0xff] }
 0x147   : > { %v464_v22 = vadd.f32 %v463_v14, %v408_v16  ;;  %v499_v23 = vadd.f32 %v498_v15, %v408_v16  ;;  %v601_v14 = vld [vmem:[%s2420_s5 + $0x18] sm:$0xff]  ;;  %v602_v15 = vld [vmem:[%s2420_s5 + $0x20] sm:$0xff] }
 0x148   : > { %v588_v5 = vmax.f32 %v531_v51, 0.0  ;;  %v589_v6 = vmax.f32 %v566_v52, 0.0 }
 0x149   : > { %v590_v34 = vmax.f32 %v464_v22, 0.0  ;;  %v591_v35 = vmax.f32 %v499_v23, 0.0  ;;  %v609_v22 = vld [vmem:[%s2420_s5 + $0x58] sm:$0xff]  ;;  %v610_v23 = vld [vmem:[%s2420_s5 + $0x60] sm:$0xff] }
 0x14d   : > { %v533_v18 = vpop.f32.mrf.mxu2  ;;  %v568_v19 = vpop.f32.mrf.mxu3 }
 0x14e   : > { %v466_v20 = vpop.f32.mrf.mxu0  ;;  %v501_v21 = vpop.f32.mrf.mxu1  ;;  %v534_v43 = vadd.f32 %v533_v18, %v408_v16  ;;  %v569_v44 = vadd.f32 %v568_v19, %v408_v16  ;;  %v603_v16 = vld [vmem:[%s2420_s5 + $0x28] sm:$0xff]  ;;  %v605_v18 = vld [vmem:[%s2420_s5 + $0x38] sm:$0xff]  ;;  %v606_v19 = vld [vmem:[%s2420_s5 + $0x40] sm:$0xff] }
 0x14f   : > { %v467_v24 = vadd.f32 %v466_v20, %v413_v7  ;;  %v502_v25 = vadd.f32 %v501_v21, %v413_v7  ;;  %v607_v20 = vld [vmem:[%s2420_s5 + $0x48] sm:$0xff]  ;;  %v608_v21 = vld [vmem:[%s2420_s5 + $0x50] sm:$0xff] }
 0x150   : > { %v592_v59 = vmax.f32 %v534_v43, 0.0  ;;  %v593_v60 = vmax.f32 %v569_v44, 0.0 }
 0x151   : > { %v594_v28 = vmax.f32 %v467_v24, 0.0  ;;  %v595_v29 = vmax.f32 %v502_v25, 0.0  ;;  %v611_v24 = vld [vmem:[%s2420_s5 + $0x68] sm:$0xff]  ;;  %v612_v25 = vld [vmem:[%s2420_s5 + $0x70] sm:$0xff] }
 0x153   : > { %681 = vmatpush.msrb.mxu0 %v594_v28  ;;  %752 = vmatpush.msrb.mxu1 %v595_v29  ;;  %v614_v29 = vld [vmem:[%s2420_s5 + $0x80] sm:$0xff] }
 0x155   : > { %v536_v40 = vpop.f32.mrf.mxu2  ;;  %v571_v41 = vpop.f32.mrf.mxu3  ;;  %682 = vmatpush.msrb.mxu0 %v590_v34  ;;  %753 = vmatpush.msrb.mxu1 %v591_v35 }
 0x156   : > { %v537_v45 = vadd.f32 %v536_v40, %v413_v7  ;;  %v572_v46 = vadd.f32 %v571_v41, %v413_v7  ;;  %v598_v7 = vld [vmem:[%s2420_s5] sm:$0xff] }
 0x157   : > { %683 = vmatpush.msrb.mxu0 %v586_v38  ;;  %754 = vmatpush.msrb.mxu1 %v587_v39 }
 0x158   : > { %v596_v53 = vmax.f32 %v537_v45, 0.0  ;;  %v597_v54 = vmax.f32 %v572_v46, 0.0 }
 0x159   : > { %684 = vmatpush.msrb.mxu0 %v582_v49  ;;  %755 = vmatpush.msrb.mxu1 %v583_v50 }
 0x15a   : > { %823 = vmatpush.msrb.mxu2 %v596_v53  ;;  %894 = vmatpush.msrb.mxu3 %v597_v54 }
 0x15b   : > { %685 = vmatpush.msrb.mxu0 %v578_v55  ;;  %756 = vmatpush.msrb.mxu1 %v579_v56 }
 0x15c   : > { %824 = vmatpush.msrb.mxu2 %v592_v59  ;;  %895 = vmatpush.msrb.mxu3 %v593_v60 }
 0x15d   : > { %686 = vmatpush.msrb.mxu0 %v574_v61  ;;  %757 = vmatpush.msrb.mxu1 %v575_v62 }
 0x15e   : > { %825 = vmatpush.msrb.mxu2 %v588_v5  ;;  %896 = vmatpush.msrb.mxu3 %v589_v6 }
 0x15f   : > { %1527 = vmatmul.msk.f32.vlgmr.msrb.gmra.mxu0 %vm616_vm1, %v598_v7  ;;  %1545 = vmatmul.msk.f32.vlgmr.msrb.gmra.mxu1 %vm616_vm1, %v598_v7 }
 0x160   : > { %826 = vmatpush.msrb.mxu2 %v584_v3  ;;  %897 = vmatpush.msrb.mxu3 %v585_v10 }
 0x162   : > { %827 = vmatpush.msrb.mxu2 %v580_v4  ;;  %898 = vmatpush.msrb.mxu3 %v581_v11 }
 0x164   : > { %828 = vmatpush.msrb.mxu2 %v576_v12  ;;  %899 = vmatpush.msrb.mxu3 %v577_v13 }
 0x165   : > { %1563 = vmatmul.msk.f32.vlgmr.msrb.gmra.mxu2 %vm616_vm1, %v598_v7  ;;  %1581 = vmatmul.msk.f32.vlgmr.msrb.gmra.mxu3 %vm616_vm1, %v598_v7 }
 0x167   : > { %1528 = vmatmul.msk.f32.gmra.mxu0 %vm616_vm1, %v599_v63  ;;  %1546 = vmatmul.msk.f32.gmra.mxu1 %vm616_vm1, %v599_v63 }
 0x16d   : > { %1564 = vmatmul.msk.f32.gmra.mxu2 %vm616_vm1, %v599_v63  ;;  %1582 = vmatmul.msk.f32.gmra.mxu3 %vm616_vm1, %v599_v63 }
 0x16f   : > { %1529 = vmatmul.msk.f32.gmra.mxu0 %vm616_vm1, %v600_v0  ;;  %1547 = vmatmul.msk.f32.gmra.mxu1 %vm616_vm1, %v600_v0 }
 0x175   : > { %1565 = vmatmul.msk.f32.gmra.mxu2 %vm616_vm1, %v600_v0  ;;  %1583 = vmatmul.msk.f32.gmra.mxu3 %vm616_vm1, %v600_v0 }
 0x177   : > { %1530 = vmatmul.msk.f32.gmra.mxu0 %vm616_vm1, %v601_v14  ;;  %1548 = vmatmul.msk.f32.gmra.mxu1 %vm616_vm1, %v601_v14 }
 0x17d   : > { %1566 = vmatmul.msk.f32.gmra.mxu2 %vm616_vm1, %v601_v14  ;;  %1584 = vmatmul.msk.f32.gmra.mxu3 %vm616_vm1, %v601_v14  ;;  %v971_v14 = vlaneseq }
 0x17f   : > { %1531 = vmatmul.msk.f32.gmra.mxu0 %vm616_vm1, %v602_v15  ;;  %1549 = vmatmul.msk.f32.gmra.mxu1 %vm616_vm1, %v602_v15 }
 0x185   : > { %1567 = vmatmul.msk.f32.gmra.mxu2 %vm616_vm1, %v602_v15  ;;  %1585 = vmatmul.msk.f32.gmra.mxu3 %vm616_vm1, %v602_v15 }
 0x187   : > { %1532 = vmatmul.msk.f32.gmra.mxu0 %vm616_vm1, %v603_v16  ;;  %1550 = vmatmul.msk.f32.gmra.mxu1 %vm616_vm1, %v603_v16 }
 0x18d   : > { %1568 = vmatmul.msk.f32.gmra.mxu2 %vm616_vm1, %v603_v16  ;;  %1586 = vmatmul.msk.f32.gmra.mxu3 %vm616_vm1, %v603_v16 }
 0x18f   : > { %1533 = vmatmul.msk.f32.gmra.mxu0 %vm616_vm1, %v604_v17  ;;  %1551 = vmatmul.msk.f32.gmra.mxu1 %vm616_vm1, %v604_v17 }
 0x195   : > { %1569 = vmatmul.msk.f32.gmra.mxu2 %vm616_vm1, %v604_v17  ;;  %1587 = vmatmul.msk.f32.gmra.mxu3 %vm616_vm1, %v604_v17 }
 0x197   : > { %1534 = vmatmul.msk.f32.gmra.mxu0 %vm616_vm1, %v605_v18  ;;  %1552 = vmatmul.msk.f32.gmra.mxu1 %vm616_vm1, %v605_v18 }
 0x19d   : > { %1570 = vmatmul.msk.f32.gmra.mxu2 %vm616_vm1, %v605_v18  ;;  %1588 = vmatmul.msk.f32.gmra.mxu3 %vm616_vm1, %v605_v18 }
 0x19f   : > { %1535 = vmatmul.msk.f32.gmra.mxu0 %vm616_vm1, %v606_v19  ;;  %1553 = vmatmul.msk.f32.gmra.mxu1 %vm616_vm1, %v606_v19 }
 0x1a5   : > { %1571 = vmatmul.msk.f32.gmra.mxu2 %vm616_vm1, %v606_v19  ;;  %1589 = vmatmul.msk.f32.gmra.mxu3 %vm616_vm1, %v606_v19  ;;  %v2033_v19 = vand.u32 127, %v971_v14 }
 0x1a7   : > { %1536 = vmatmul.msk.f32.gmra.mxu0 %vm616_vm1, %v607_v20  ;;  %1554 = vmatmul.msk.f32.gmra.mxu1 %vm616_vm1, %v607_v20  ;;  %vm973_vm2 = vcmp.lt.s32.totalorder %v2033_v19, 9  ;;  %vm1024_vm3 = vcmp.lt.s32.totalorder %v2033_v19, 8  ;;  %vm1076_vm4 = vcmp.lt.s32.totalorder %v2033_v19, 7  ;;  %vm1128_vm5 = vcmp.lt.s32.totalorder %v2033_v19, 1 }
 0x1a8   : > { %vm1180_vm6 = vcmp.lt.s32.totalorder %v2033_v19, 127  ;;  %vm1232_vm7 = vcmp.lt.s32.totalorder %v2033_v19, 121  ;;  %vm1284_vm8 = vcmp.lt.s32.totalorder %v2033_v19, 120  ;;  %vm1336_vm9 = vcmp.lt.s32.totalorder %v2033_v19, 119  ;;  %v1402_v19 = vld [vmem:[%s1786_s19] sm:$0xff] (%p1752_p5) }
 0x1ad   : > { %1572 = vmatmul.msk.f32.gmra.mxu2 %vm616_vm1, %v607_v20  ;;  %1590 = vmatmul.msk.f32.gmra.mxu3 %vm616_vm1, %v607_v20  ;;  %v2038_v20 = vld [vmem:[%s2421_s6] ss:$8 sm:$0xf] }
 0x1af   : > { %1537 = vmatmul.msk.f32.gmra.mxu0 %vm616_vm1, %v608_v21  ;;  %1555 = vmatmul.msk.f32.gmra.mxu1 %vm616_vm1, %v608_v21 }
 0x1b5   : > { %1573 = vmatmul.msk.f32.gmra.mxu2 %vm616_vm1, %v608_v21  ;;  %1591 = vmatmul.msk.f32.gmra.mxu3 %vm616_vm1, %v608_v21  ;;  %v986_v21 = vperm.slane %v2038_v20, 2 }
 0x1b7   : > { %1538 = vmatmul.msk.f32.gmra.mxu0 %vm616_vm1, %v609_v22  ;;  %1556 = vmatmul.msk.f32.gmra.mxu1 %vm616_vm1, %v609_v22 }
 0x1bd   : > { %1574 = vmatmul.msk.f32.gmra.mxu2 %vm616_vm1, %v609_v22  ;;  %1592 = vmatmul.msk.f32.gmra.mxu3 %vm616_vm1, %v609_v22  ;;  %v985_v22 = vperm.slane %v2038_v20, 1 }
 0x1bf   : > { %1539 = vmatmul.msk.f32.gmra.mxu0 %vm616_vm1, %v610_v23  ;;  %1557 = vmatmul.msk.f32.gmra.mxu1 %vm616_vm1, %v610_v23 }
 0x1c5   : > { %1575 = vmatmul.msk.f32.gmra.mxu2 %vm616_vm1, %v610_v23  ;;  %1593 = vmatmul.msk.f32.gmra.mxu3 %vm616_vm1, %v610_v23 }
 0x1c7   : > { %1540 = vmatmul.msk.f32.gmra.mxu0 %vm616_vm1, %v611_v24  ;;  %1558 = vmatmul.msk.f32.gmra.mxu1 %vm616_vm1, %v611_v24 }
 0x1cd   : > { %1576 = vmatmul.msk.f32.gmra.mxu2 %vm616_vm1, %v611_v24  ;;  %1594 = vmatmul.msk.f32.gmra.mxu3 %vm616_vm1, %v611_v24 }
 0x1cf   : > { %1541 = vmatmul.msk.f32.gmra.mxu0 %vm616_vm1, %v612_v25  ;;  %1559 = vmatmul.msk.f32.gmra.mxu1 %vm616_vm1, %v612_v25 }
 0x1d5   : > { %1577 = vmatmul.msk.f32.gmra.mxu2 %vm616_vm1, %v612_v25  ;;  %1595 = vmatmul.msk.f32.gmra.mxu3 %vm616_vm1, %v612_v25 }
 0x1d7   : > { %1542 = vmatmul.msk.f32.gmra.mxu0 %vm616_vm1, %v613_v26  ;;  %1560 = vmatmul.msk.f32.gmra.mxu1 %vm616_vm1, %v613_v26 }
 0x1dc   : > { %v688_v27 = vpop.f32.mrf.mxu0  ;;  %v759_v28 = vpop.f32.mrf.mxu1 }
 0x1dd   : > { %959 = vrot.lane.b32.xlu0 %v759_v28, %s1674_s23  ;;  %955 = vrot.lane.b32.xlu1 %v688_v27, %s1674_s23 }
 0x1de   : > { %1578 = vmatmul.msk.f32.gmra.mxu2 %vm616_vm1, %v613_v26  ;;  %1596 = vmatmul.msk.f32.gmra.mxu3 %vm616_vm1, %v613_v26 }
 0x1df   : > { %1543 = vmatmul.msk.f32.gmra.mxu0 %vm616_vm1, %v614_v29  ;;  %1561 = vmatmul.msk.f32.gmra.mxu1 %vm616_vm1, %v614_v29 }
 0x1e4   : > { %v691_v30 = vpop.f32.mrf.mxu0  ;;  %v762_v31 = vpop.f32.mrf.mxu1 }
 0x1e5   : > { %961 = vrot.lane.b32.xlu1 %v762_v31, %s1674_s23  ;;  %957 = vrot.lane.b32.xlu2 %v691_v30, %s1674_s23 }
 0x1e6   : > { %1579 = vmatmul.msk.f32.gmra.mxu2 %vm616_vm1, %v614_v29  ;;  %1597 = vmatmul.msk.f32.gmra.mxu3 %vm616_vm1, %v614_v29 }
 0x1e7   : > { %1544 = vmatmul.msk.f32.gmra.mxu0 %vm616_vm1, %v615_v32  ;;  %1562 = vmatmul.msk.f32.gmra.mxu1 %vm616_vm1, %v615_v32 }
 0x1e8   : > { %v830_v33 = vpop.f32.mrf.mxu2  ;;  %v901_v34 = vpop.f32.mrf.mxu3 }
 0x1ec   : > { %v694_v35 = vpop.f32.mrf.mxu0  ;;  %v765_v36 = vpop.f32.mrf.mxu1 }
 0x1ed   : > { %967 = vrot.lane.b32.xlu1 %v901_v34, %s1674_s23  ;;  %963 = vrot.lane.b32.xlu2 %v830_v33, %s1674_s23 }
 0x1ee   : > { %1008 = vrot.lane.b32.xlu0 %v694_v35, %s1675_s10  ;;  %1598 = vmatmul.msk.f32.gmra.mxu3 %vm616_vm1, %v615_v32 }
 0x1ef   : > { %1580 = vmatmul.msk.f32.gmra.mxu2 %vm616_vm1, %v615_v32 }
 0x1f0   : > { %v833_v37 = vpop.f32.mrf.mxu2  ;;  %v904_v38 = vpop.f32.mrf.mxu3 }
 0x1f4   : > { %v697_v39 = vpop.f32.mrf.mxu0  ;;  %v768_v40 = vpop.f32.mrf.mxu1 }
 0x1f5   : > { %1012 = vrot.lane.b32.xlu2 %v765_v36, %s1675_s10  ;;  %1010 = vrot.lane.b32.xlu1 %v697_v39, %s1675_s10  ;;  %v984_v36 = vperm.slane %v2038_v20, 0 }
 0x1f6   : > { %965 = vrot.lane.b32.xlu0 %v833_v37, %s1674_s23 }
 0x1f8   : > { %v836_v41 = vpop.f32.mrf.mxu2  ;;  %v907_v42 = vpop.f32.mrf.mxu3 }
 0x1fc   : > { %v700_v43 = vpop.f32.mrf.mxu0  ;;  %v771_v44 = vpop.f32.mrf.mxu1 }
 0x1fd   : > { %969 = vrot.lane.b32.xlu2 %v904_v38, %s1674_s23  ;;  %1016 = vrot.lane.b32.xlu1 %v836_v41, %s1675_s10 }
 0x1fe   : > { %1014 = vrot.lane.b32.xlu0 %v768_v40, %s1675_s10 }
 0x200   : > { %v839_v45 = vpop.f32.mrf.mxu2  ;;  %v910_v46 = vpop.f32.mrf.mxu3 }
 0x204   : > { %v703_v47 = vpop.f32.mrf.mxu0  ;;  %v774_v48 = vpop.f32.mrf.mxu1 }
 0x205   : > { %1064 = vrot.lane.b32.xlu1 %v771_v44, %s1676_s11  ;;  %1060 = vrot.lane.b32.xlu2 %v700_v43, %s1676_s11 }
 0x206   : > { %1020 = vrot.lane.b32.xlu0 %v907_v42, %s1675_s10 }
 0x208   : > { %v842_v49 = vpop.f32.mrf.mxu2  ;;  %v913_v50 = vpop.f32.mrf.mxu3 }
 0x20c   : > { %v706_v51 = vpop.f32.mrf.mxu0  ;;  %v777_v52 = vpop.f32.mrf.mxu1 }
 0x20d   : > { %1022 = vrot.lane.b32.xlu1 %v910_v46, %s1675_s10  ;;  %1018 = vrot.lane.b32.xlu2 %v839_v45, %s1675_s10 }
 0x20e   : > { %1062 = vrot.lane.b32.xlu0 %v703_v47, %s1676_s11  ;;  %v2067_v47 = vld [vmem:[%s2421_s6 + $0x1] ss:$8 sm:$0xf] }
 0x210   : > { %v845_v53 = vpop.f32.mrf.mxu2  ;;  %v916_v54 = vpop.f32.mrf.mxu3 }
 0x214   : > { %v709_v55 = vpop.f32.mrf.mxu0  ;;  %v780_v56 = vpop.f32.mrf.mxu1 }
 0x215   : > { %1112 = vrot.lane.b32.xlu1 %v706_v51, %s1677_s12  ;;  %1066 = vrot.lane.b32.xlu2 %v774_v48, %s1676_s11  ;;  %v1037_v51 = vperm.slane %v2067_v47, 1 }
 0x216   : > { %1068 = vrot.lane.b32.xlu0 %v842_v49, %s1676_s11  ;;  %v987_v49 = vperm.slane %v2038_v20, 3 }
 0x218   : > { %v848_v57 = vpop.f32.mrf.mxu2  ;;  %v919_v58 = vpop.f32.mrf.mxu3 }
 0x21c   : > { %v2007_v59 = vpop.f32.mrf.mxu0  ;;  %v2009_v60 = vpop.f32.mrf.mxu1 }
 0x21d   : > { %1070 = vrot.lane.b32.xlu1 %v845_v53, %s1676_s11  ;;  %1072 = vrot.lane.b32.xlu2 %v913_v50, %s1676_s11 }
 0x21e   : > { %1116 = vrot.lane.b32.xlu0 %v777_v52, %s1677_s12 }
 0x220   : > { %v851_v61 = vpop.f32.mrf.mxu2  ;;  %v922_v62 = vpop.f32.mrf.mxu3 }
 0x224   : > { %v2014_v1 = vpop.f32.mrf.mxu0  ;;  %v2016_v2 = vpop.f32.mrf.mxu1 }
 0x225   : > { %1118 = vrot.lane.b32.xlu1 %v780_v56, %s1677_s12  ;;  %1114 = vrot.lane.b32.xlu2 %v709_v55, %s1677_s12 }
 0x226   : > { %1074 = vrot.lane.b32.xlu0 %v916_v54, %s1676_s11 }
 0x228   : > { %v854_v5 = vpop.f32.mrf.mxu2  ;;  %v2021_v6 = vpop.f32.mrf.mxu3 }
 0x22c   : > { %v718_v7 = vpop.f32.mrf.mxu0  ;;  %v789_v8 = vpop.f32.mrf.mxu1 }
 0x22d   : > { %1124 = vrot.lane.b32.xlu1 %v919_v58, %s1677_s12  ;;  %1120 = vrot.lane.b32.xlu2 %v848_v57, %s1677_s12 }
 0x22e   : > { %1122 = vrot.lane.b32.xlu0 %v851_v61, %s1677_s12 }
 0x230   : > { %v2026_v9 = vpop.f32.mrf.mxu2  ;;  %v2028_v3 = vpop.f32.mrf.mxu3 }
 0x234   : > { %v721_v10 = vpop.f32.mrf.mxu0  ;;  %v792_v4 = vpop.f32.mrf.mxu1 }
 0x235   : > { %1166 = vrot.lane.b32.xlu1 %v721_v10, %s1678_s13  ;;  %1126 = vrot.lane.b32.xlu2 %v922_v62, %s1677_s12 }
 0x236   : > { %1164 = vrot.lane.b32.xlu0 %v718_v7, %s1678_s13 }
 0x238   : > { %v860_v11 = vpop.f32.mrf.mxu2  ;;  %v931_v12 = vpop.f32.mrf.mxu3 }
 0x23c   : > { %v724_v13 = vpop.f32.mrf.mxu0  ;;  %v795_v0 = vpop.f32.mrf.mxu1 }
 0x23d   : > { %1172 = vrot.lane.b32.xlu1 %v860_v11, %s1678_s13  ;;  %1168 = vrot.lane.b32.xlu2 %v789_v8, %s1678_s13 }
 0x23e   : > { %1170 = vrot.lane.b32.xlu0 %v792_v4, %s1678_s13 }
 0x23f   : > { %v958_v63 = vpop.permute.xlu2 %957 }
 0x240   : > { %v863_v15 = vpop.f32.mrf.mxu2  ;;  %v934_v16 = vpop.f32.mrf.mxu3 }
 0x244   : > { %v727_v18 = vpop.f32.mrf.mxu0  ;;  %v798_v23 = vpop.f32.mrf.mxu1 }
 0x245   : > { %1220 = vrot.lane.b32.xlu1 %v795_v0, %s1679_s14  ;;  %1216 = vrot.lane.b32.xlu2 %v724_v13, %s1679_s14 }
 0x246   : > { %1176 = vrot.lane.b32.xlu0 %v931_v12, %s1678_s13 }
 0x247   : > { %v964_v17 = vpop.permute.xlu2 %963 }
 0x248   : > { %v937_v24 = vpop.f32.mrf.mxu3  ;;  %v866_v30 = vpop.f32.mrf.mxu2 }
 0x24c   : > { %v730_v33 = vpop.f32.mrf.mxu0  ;;  %v801_v40 = vpop.f32.mrf.mxu1 }
 0x24d   : > { %1178 = vrot.lane.b32.xlu1 %v934_v16, %s1678_s13  ;;  %1174 = vrot.lane.b32.xlu2 %v863_v15, %s1678_s13  ;;  %v1038_v15 = vperm.slane %v2067_v47, 2 }
 0x24e   : > { %1218 = vrot.lane.b32.xlu0 %v727_v18, %s1679_s14 }
 0x24f   : > { %v960_v25 = vpop.permute.xlu0 %959  ;;  %v956_v26 = vpop.permute.xlu1 %955 }
 0x250   : > { %v976_v27 = vsel %vm973_vm2, %v960_v25, %v964_v17  ;;  %v978_v28 = vsel %vm973_vm2, %v956_v26, %v960_v25  ;;  %v2048_v29 = vpop.permute.xlu2 %1012  ;;  %v940_v43 = vpop.f32.mrf.mxu3 }
 0x251   : > { %v994_v31 = vmul.f32 %v986_v21, %v976_v27  ;;  %v993_v32 = vmul.f32 %v985_v22, %v978_v28  ;;  %v869_v45 = vpop.f32.mrf.mxu2  ;;  %v2121_v28 = vld [vmem:[%s2421_s6 + $0x2] ss:$8 sm:$0xf] }
 0x253   : > { %v2052_v34 = vadd.f32 %v994_v31, %v854_v5  ;;  %v1001_v35 = vadd.f32 %v993_v32, %v2009_v60  ;;  %v1089_v32 = vperm.slane %v2121_v28, 1 }
 0x254   : > { %v733_v50 = vpop.f32.mrf.mxu0  ;;  %v804_v62 = vpop.f32.mrf.mxu1 }
 0x255   : > { %1268 = vrot.lane.b32.xlu1 %v730_v33, %s1680_s17  ;;  %1222 = vrot.lane.b32.xlu2 %v798_v23, %s1679_s14  ;;  %v1036_v33 = vperm.slane %v2067_v47, 0 }
 0x256   : > { %1224 = vrot.lane.b32.xlu0 %v866_v30, %s1679_s14 }
 0x257   : > { %v962_v37 = vpop.permute.xlu1 %961 }
 0x258   : > { %v979_v38 = vsel %vm973_vm2, %v958_v63, %v962_v37  ;;  %v970_v39 = vpop.permute.xlu2 %969  ;;  %v943_v5 = vpop.f32.mrf.mxu3 }
 0x259   : > { %v997_v41 = vmul.f32 %v985_v22, %v979_v38  ;;  %v981_v42 = vsel %vm973_vm2, %v970_v39, %v958_v63  ;;  %v872_v8 = vpop.f32.mrf.mxu2 }
 0x25a   : > { %v996_v44 = vmul.f32 %v984_v36, %v981_v42 }
 0x25b   : > { %v1005_v46 = vadd.f32 %v997_v41, %v2016_v2 }
 0x25c   : > { %v2070_v48 = vadd.f32 %v996_v44, %v2014_v1  ;;  %v736_v4 = vpop.f32.mrf.mxu0 }
 0x25d   : > { %1226 = vrot.lane.b32.xlu1 %v869_v45, %s1679_s14  ;;  %1228 = vrot.lane.b32.xlu2 %v937_v24, %s1679_s14  ;;  %v807_v24 = vpop.f32.mrf.mxu1 }
 0x25e   : > { %1272 = vrot.lane.b32.xlu0 %v801_v40, %s1680_s17 }
 0x25f   : > { %v968_v52 = vpop.permute.xlu1 %967 }
 0x260   : > { %v974_v53 = vsel %vm973_vm2, %v964_v17, %v968_v52  ;;  %v980_v54 = vsel %vm973_vm2, %v968_v52, %v956_v26  ;;  %v1009_v55 = vpop.permute.xlu0 %1008  ;;  %v2082_v56 = vpop.permute.xlu2 %1060 }
 0x261   : > { %v992_v57 = vmul.f32 %v984_v36, %v980_v54  ;;  %v995_v58 = vmul.f32 %v987_v49, %v974_v53  ;;  %v1029_v60 = vsel %vm1024_vm3, %v1009_v55, %v2048_v29  ;;  %v946_v16 = vpop.f32.mrf.mxu3  ;;  %v875_v18 = vpop.f32.mrf.mxu2 }
 0x262   : > { %v1045_v61 = vmul.f32 %v1037_v51, %v1029_v60 }
 0x263   : > { %v1000_v1 = vadd.f32 %v992_v57, %v2007_v59  ;;  %v1003_v2 = vadd.f32 %v995_v58, %v2021_v6 }
 0x264   : > { %v1053_v7 = vadd.f32 %v1045_v61, %v1001_v35  ;;  %v739_v27 = vpop.f32.mrf.mxu0  ;;  %v1039_v35 = vperm.slane %v2067_v47, 3 }
 0x265   : > { %1274 = vrot.lane.b32.xlu1 %v804_v62, %s1680_s17  ;;  %1270 = vrot.lane.b32.xlu2 %v733_v50, %s1680_s17  ;;  %v810_v50 = vpop.f32.mrf.mxu1 }
 0x266   : > { %1230 = vrot.lane.b32.xlu0 %v940_v43, %s1679_s14 }
 0x267   : > { %v2092_v10 = vpop.permute.xlu1 %1010 }
 0x268   : > { %v966_v11 = vpop.permute.xlu0 %965  ;;  %v1019_v12 = vpop.permute.xlu2 %1018 }
 0x269   : > { %v975_v13 = vsel %vm973_vm2, %v966_v11, %v970_v39  ;;  %v977_v59 = vsel %vm973_vm2, %v962_v37, %v966_v11  ;;  %v949_v37 = vpop.f32.mrf.mxu3  ;;  %v1088_v39 = vperm.slane %v2121_v28, 0  ;;  %v878_v47 = vpop.f32.mrf.mxu2 }
 0x26a   : > { %v998_v6 = vmul.f32 %v986_v21, %v977_v59  ;;  %v999_v63 = vmul.f32 %v987_v49, %v975_v13 }
 0x26c   : > { %v1006_v0 = vadd.f32 %v998_v6, %v2026_v9  ;;  %v2102_v14 = vadd.f32 %v999_v63, %v2028_v3 }
 0x26d   : > { %1280 = vrot.lane.b32.xlu1 %v943_v5, %s1680_s17  ;;  %1276 = vrot.lane.b32.xlu2 %v872_v8, %s1680_s17 }
 0x26e   : > { %1320 = vrot.lane.b32.xlu0 %v736_v4, %s1681_s20 }
 0x26f   : > { %v1017_v17 = vpop.permute.xlu1 %1016 }
 0x270   : > { %v1015_v20 = vpop.permute.xlu0 %1014  ;;  %v1027_v9 = vsel %vm1024_vm3, %v2048_v29, %v1017_v17  ;;  %v2111_v21 = vpop.permute.xlu2 %1066 }
 0x271   : > { %v1028_v3 = vsel %vm1024_vm3, %v1015_v20, %v1019_v12  ;;  %v1030_v22 = vsel %vm1024_vm3, %v2092_v10, %v1015_v20  ;;  %v1046_v23 = vmul.f32 %v1038_v15, %v1027_v9  ;;  %v952_v5 = vpop.f32.mrf.mxu3 }
 0x272   : > { %v1049_v25 = vmul.f32 %v1037_v51, %v1030_v22  ;;  %v1050_v26 = vmul.f32 %v1038_v15, %v1028_v3  ;;  %v1601_v15 = vld [vmem:[%s2421_s6 + $0x3] ss:$8 sm:$0xf] }
 0x273   : > { %v1054_v29 = vadd.f32 %v1046_v23, %v2052_v34  ;;  %v1142_v20 = vperm.slane %v1601_v15, 2 }
 0x274   : > { %v1057_v30 = vadd.f32 %v1049_v25, %v1005_v46  ;;  %v2124_v31 = vadd.f32 %v1050_v26, %v1006_v0 }
 0x275   : > { %1322 = vrot.lane.b32.xlu1 %v739_v27, %s1681_s20  ;;  %1324 = vrot.lane.b32.xlu2 %v807_v24, %s1681_s20 }
 0x276   : > { %1278 = vrot.lane.b32.xlu0 %v875_v18, %s1680_s17  ;;  %v1141_v18 = vperm.slane %v1601_v15, 1 }
 0x277   : > { %v1065_v36 = vpop.permute.xlu1 %1064 }
 0x278   : > { %v1021_v34 = vpop.permute.xlu0 %1020  ;;  %v1081_v38 = vsel %vm1076_vm4, %v2082_v56, %v1065_v36  ;;  %v1073_v40 = vpop.permute.xlu2 %1072 }
 0x279   : > { %v1025_v41 = vsel %vm1024_vm3, %v1017_v17, %v1021_v34  ;;  %v1031_v42 = vsel %vm1024_vm3, %v1021_v34, %v1009_v55  ;;  %v1097_v43 = vmul.f32 %v1089_v32, %v1081_v38  ;;  %v1083_v44 = vsel %vm1076_vm4, %v1073_v40, %v2082_v56 }
 0x27a   : > { %v1044_v45 = vmul.f32 %v1036_v33, %v1031_v42  ;;  %v1047_v46 = vmul.f32 %v1039_v35, %v1025_v41  ;;  %v1096_v53 = vmul.f32 %v1088_v39, %v1083_v44 }
 0x27b   : > { %v1105_v49 = vadd.f32 %v1097_v43, %v1053_v7  ;;  %v881_v7 = vpop.f32.mrf.mxu2 }
 0x27c   : > { %v1052_v51 = vadd.f32 %v1044_v45, %v1000_v1  ;;  %v1055_v52 = vadd.f32 %v1047_v46, %v1003_v2 }
 0x27d   : > { %1328 = vrot.lane.b32.xlu1 %v878_v47, %s1681_s20  ;;  %1282 = vrot.lane.b32.xlu2 %v946_v16, %s1680_s17  ;;  %s1612_s17 = sshll.u32 (%p1752_p5), %s1493_s27, 5 }
 0x27e   : > { %v2148_v54 = vadd.f32 %v1096_v53, %v1052_v51  ;;  %1326 = vrot.lane.b32.xlu0 %v810_v50, %s1681_s20  ;;  %s1389_s9 = scalar_lea.vmem (%p1752_p5), %s2422_s7, %s1612_s17 }
 0x27f   : > { %v1023_v55 = vpop.permute.xlu1 %1022  ;;  %1403 = vst [vmem:[%s1389_s9] sm:$0xff] (%p1752_p5), %v1402_v19 }
 0x280   : > { %v1026_v56 = vsel %vm1024_vm3, %v1019_v12, %v1023_v55  ;;  %v1032_v57 = vsel %vm1024_vm3, %v1023_v55, %v2092_v10  ;;  %v1063_v58 = vpop.permute.xlu0 %1062  ;;  %v1115_v60 = vpop.permute.xlu2 %1114  ;;  %v1090_v10 = vperm.slane %v2121_v28, 2  ;;  %v1091_v12 = vperm.slane %v2121_v28, 3 }
 0x281   : > { %v1048_v61 = vmul.f32 %v1036_v33, %v1032_v57  ;;  %v1051_v62 = vmul.f32 %v1039_v35, %v1026_v56  ;;  %v1082_v1 = vsel %vm1076_vm4, %v1063_v58, %v2111_v21 }
 0x282   : > { %v1101_v2 = vmul.f32 %v1089_v32, %v1082_v1 }
 0x283   : > { %v1056_v8 = vadd.f32 %v1048_v61, %v2070_v48  ;;  %v1059_v4 = vadd.f32 %v1051_v62, %v2102_v14 }
 0x284   : > { %v1109_v11 = vadd.f32 %v1101_v2, %v1057_v30 }
 0x285   : > { %1334 = vrot.lane.b32.xlu1 %v952_v5, %s1681_s20  ;;  %1330 = vrot.lane.b32.xlu2 %v881_v7, %s1681_s20 }
 0x286   : > { %1332 = vrot.lane.b32.xlu0 %v949_v37, %s1681_s20  ;;  %v1140_v37 = vperm.slane %v1601_v15, 0 }
 0x287   : > { %v1113_v13 = vpop.permute.xlu1 %1112 }
 0x288   : > { %v1069_v59 = vpop.permute.xlu0 %1068  ;;  %v1121_v6 = vpop.permute.xlu2 %1120 }
 0x289   : > { %v1077_v63 = vsel %vm1076_vm4, %v1069_v59, %v1073_v40  ;;  %v1079_v48 = vsel %vm1076_vm4, %v1065_v36, %v1069_v59 }
 0x28a   : > { %v1098_v0 = vmul.f32 %v1090_v10, %v1079_v48  ;;  %v1099_v14 = vmul.f32 %v1091_v12, %v1077_v63 }
 0x28c   : > { %v1106_v16 = vadd.f32 %v1098_v0, %v1054_v29  ;;  %v1107_v17 = vadd.f32 %v1099_v14, %v1055_v52 }
 0x28f   : > { %v1071_v9 = vpop.permute.xlu1 %1070 }
 0x290   : > { %v1117_v3 = vpop.permute.xlu0 %1116  ;;  %v1080_v22 = vsel %vm1076_vm4, %v2111_v21, %v1071_v9  ;;  %v1127_v23 = vpop.permute.xlu2 %1126 }
 0x291   : > { %v1131_v24 = vsel %vm1128_vm5, %v1117_v3, %v1121_v6  ;;  %v1133_v25 = vsel %vm1128_vm5, %v1113_v13, %v1117_v3  ;;  %v1102_v26 = vmul.f32 %v1090_v10, %v1080_v22  ;;  %v1136_v27 = vsel %vm1128_vm5, %v1127_v23, %v1115_v60 }
 0x292   : > { %v1149_v29 = vmul.f32 %v1141_v18, %v1133_v25  ;;  %v1150_v30 = vmul.f32 %v1142_v20, %v1131_v24  ;;  %v1152_v45 = vmul.f32 %v1140_v37, %v1136_v27 }
 0x293   : > { %v1110_v32 = vadd.f32 %v1102_v26, %v2124_v31 }
 0x294   : > { %v1157_v33 = vadd.f32 %v1149_v29, %v1105_v49  ;;  %v1158_v35 = vadd.f32 %v1150_v30, %v1106_v16  ;;  %v1143_v49 = vperm.slane %v1601_v15, 3  ;;  %v2233_v16 = vld [vmem:[%s2421_s6 + $0x5] ss:$8 sm:$0xf] }
 0x295   : > { %v1247_v3 = vperm.slane %v2233_v16, 3 }
 0x297   : > { %v1119_v36 = vpop.permute.xlu1 %1118 }
 0x298   : > { %v1075_v21 = vpop.permute.xlu0 %1074  ;;  %v1134_v34 = vsel %vm1128_vm5, %v1115_v60, %v1119_v36  ;;  %v2186_v38 = vpop.permute.xlu2 %1168 }
 0x299   : > { %v1078_v40 = vsel %vm1076_vm4, %v1071_v9, %v1075_v21  ;;  %v1084_v41 = vsel %vm1076_vm4, %v1075_v21, %v1063_v58  ;;  %v1153_v42 = vmul.f32 %v1141_v18, %v1134_v34 }
 0x29a   : > { %v1100_v31 = vmul.f32 %v1088_v39, %v1084_v41  ;;  %v1103_v43 = vmul.f32 %v1091_v12, %v1078_v40 }
 0x29b   : > { %v2194_v44 = vadd.f32 %v1153_v42, %v1109_v11  ;;  %v2212_v11 = vld [vmem:[%s2421_s6 + $0x4] ss:$8 sm:$0xf] }
 0x29c   : > { %v1108_v46 = vadd.f32 %v1100_v31, %v1056_v8  ;;  %v1111_v47 = vadd.f32 %v1103_v43, %v1059_v4  ;;  %v1193_v10 = vperm.slane %v2212_v11, 1  ;;  %v1195_v18 = vperm.slane %v2212_v11, 3 }
 0x29e   : > { %v1160_v50 = vadd.f32 %v1152_v45, %v1108_v46 }
 0x29f   : > { %v1125_v51 = vpop.permute.xlu1 %1124 }
 0x2a0   : > { %v1123_v52 = vpop.permute.xlu0 %1122  ;;  %v1129_v53 = vsel %vm1128_vm5, %v1121_v6, %v1125_v51  ;;  %v1135_v55 = vsel %vm1128_vm5, %v1125_v51, %v1113_v13  ;;  %v1217_v56 = vpop.permute.xlu2 %1216 }
 0x2a1   : > { %v1130_v28 = vsel %vm1128_vm5, %v1123_v52, %v1127_v23  ;;  %v1132_v39 = vsel %vm1128_vm5, %v1119_v36, %v1123_v52  ;;  %v1148_v57 = vmul.f32 %v1140_v37, %v1135_v55  ;;  %v1151_v58 = vmul.f32 %v1143_v49, %v1129_v53 }
 0x2a2   : > { %v1154_v60 = vmul.f32 %v1142_v20, %v1132_v39  ;;  %v1155_v61 = vmul.f32 %v1143_v49, %v1130_v28  ;;  %v2285_v28 = vld [vmem:[%s2421_s6 + $0x7] ss:$8 sm:$0xf] }
 0x2a3   : > { %v1156_v62 = vadd.f32 %v1148_v57, %v2148_v54  ;;  %v1159_v1 = vadd.f32 %v1151_v58, %v1107_v17  ;;  %v1192_v54 = vperm.slane %v2212_v11, 0  ;;  %v1194_v17 = vperm.slane %v2212_v11, 2 }
 0x2a4   : > { %v2205_v2 = vadd.f32 %v1154_v60, %v1110_v32  ;;  %v1163_v5 = vadd.f32 %v1155_v61, %v1111_v47  ;;  %v2272_v47 = vld [vmem:[%s2421_s6 + $0x6] ss:$8 sm:$0xf] }
 0x2a5   : > { %v1296_v55 = vperm.slane %v2272_v47, 0 }
 0x2a7   : > { %v1167_v7 = vpop.permute.xlu1 %1166 }
 0x2a8   : > { %v1165_v8 = vpop.permute.xlu0 %1164  ;;  %v2207_v4 = vpop.permute.xlu2 %1174 }
 0x2a9   : > { %v1185_v46 = vsel %vm1180_vm6, %v1165_v8, %v2186_v38 }
 0x2aa   : > { %v1200_v53 = vmul.f32 %v1192_v54, %v1185_v46  ;;  %v1349_v46 = vperm.slane %v2285_v28, 1 }
 0x2ac   : > { %v1208_v58 = vadd.f32 %v1200_v53, %v1156_v62 }
 0x2af   : > { %v1173_v12 = vpop.permute.xlu1 %1172 }
 0x2b0   : > { %v1171_v13 = vpop.permute.xlu0 %1170  ;;  %v1183_v59 = vsel %vm1180_vm6, %v2186_v38, %v1173_v12  ;;  %v2220_v6 = vpop.permute.xlu2 %1222 }
 0x2b1   : > { %v1186_v63 = vsel %vm1180_vm6, %v1167_v7, %v1171_v13  ;;  %v1201_v48 = vmul.f32 %v1193_v10, %v1183_v59  ;;  %v1184_v62 = vsel %vm1180_vm6, %v1171_v13, %v2207_v4  ;;  %v1245_v59 = vperm.slane %v2233_v16, 1 }
 0x2b2   : > { %v1204_v0 = vmul.f32 %v1192_v54, %v1186_v63 }
 0x2b3   : > { %v2226_v14 = vadd.f32 %v1201_v48, %v1157_v33 }
 0x2b4   : > { %v2228_v15 = vadd.f32 %v1204_v0, %v1160_v50  ;;  %v1244_v50 = vperm.slane %v2233_v16, 0 }
 0x2b7   : > { %v1221_v20 = vpop.permute.xlu1 %1220 }
 0x2b8   : > { %v1177_v9 = vpop.permute.xlu0 %1176  ;;  %v2239_v22 = vpop.permute.xlu2 %1228  ;;  %v1237_v52 = vsel %vm1232_vm7, %v1217_v56, %v1221_v20 }
 0x2b9   : > { %v1181_v23 = vsel %vm1180_vm6, %v1173_v12, %v1177_v9  ;;  %v1187_v24 = vsel %vm1180_vm6, %v1177_v9, %v1165_v8  ;;  %v1239_v25 = vsel %vm1232_vm7, %v2239_v22, %v1217_v56  ;;  %v1252_v39 = vmul.f32 %v1244_v50, %v1237_v52 }
 0x2ba   : > { %v1202_v26 = vmul.f32 %v1194_v17, %v1181_v23  ;;  %v1203_v27 = vmul.f32 %v1195_v18, %v1187_v24  ;;  %v1255_v32 = vmul.f32 %v1247_v3, %v1239_v25  ;;  %v1348_v56 = vperm.slane %v2285_v28, 0 }
 0x2bb   : > { %v1205_v9 = vmul.f32 %v1193_v10, %v1184_v62  ;;  %v1297_v23 = vperm.slane %v2272_v47, 1  ;;  %v1246_v10 = vperm.slane %v2233_v16, 2 }
 0x2bc   : > { %v2250_v29 = vadd.f32 %v1202_v26, %v1158_v35  ;;  %v1211_v30 = vadd.f32 %v1203_v27, %v1159_v1  ;;  %v1260_v1 = vadd.f32 %v1252_v39, %v1208_v58 }
 0x2be   : > { %v2254_v33 = vadd.f32 %v1255_v32, %v1211_v30 }
 0x2bf   : > { %v1179_v36 = vpop.permute.xlu1 %1178 }
 0x2c0   : > { %v1188_v37 = vsel %vm1180_vm6, %v1179_v36, %v1167_v7  ;;  %v1219_v21 = vpop.permute.xlu0 %1218  ;;  %v2262_v42 = vpop.permute.xlu2 %1270  ;;  %v1182_v48 = vsel %vm1180_vm6, %v2207_v4, %v1179_v36  ;;  %v1213_v36 = vadd.f32 %v1205_v9, %v2194_v44  ;;  %v1298_v44 = vperm.slane %v2272_v47, 2 }
 0x2c1   : > { %v1207_v34 = vmul.f32 %v1195_v18, %v1188_v37  ;;  %v1238_v13 = vsel %vm1232_vm7, %v1219_v21, %v2220_v6 }
 0x2c2   : > { %v1256_v27 = vmul.f32 %v1244_v50, %v1238_v13 }
 0x2c3   : > { %v2258_v40 = vadd.f32 %v1207_v34, %v1163_v5 }
 0x2c7   : > { %v2260_v41 = vpop.permute.xlu1 %1268 }
 0x2c8   : > { %v1225_v35 = vpop.permute.xlu0 %1224  ;;  %v2264_v45 = vpop.permute.xlu2 %1276 }
 0x2c9   : > { %v1235_v0 = vsel %vm1232_vm7, %v1221_v20, %v1225_v35  ;;  %v1206_v20 = vmul.f32 %v1194_v17, %v1182_v48  ;;  %v1233_v37 = vsel %vm1232_vm7, %v1225_v35, %v2239_v22  ;;  %v1264_v35 = vadd.f32 %v1256_v27, %v2228_v15 }
 0x2ca   : > { %v1253_v26 = vmul.f32 %v1245_v59, %v1235_v0  ;;  %v1350_v0 = vperm.slane %v2285_v28, 2 }
 0x2cb   : > { %v1214_v22 = vadd.f32 %v1206_v20, %v2205_v2 }
 0x2cc   : > { %v1261_v50 = vadd.f32 %v1253_v26, %v2226_v14 }
 0x2cf   : > { %v1227_v31 = vpop.permute.xlu1 %1226 }
 0x2d0   : > { %v1273_v43 = vpop.permute.xlu0 %1272  ;;  %v1325_v57 = vpop.permute.xlu2 %1324  ;;  %v1236_v24 = vsel %vm1232_vm7, %v2220_v6, %v1227_v31 }
 0x2d1   : > { %v1289_v38 = vsel %vm1284_vm8, %v2260_v41, %v1273_v43  ;;  %v1287_v4 = vsel %vm1284_vm8, %v1273_v43, %v2264_v45  ;;  %v1257_v30 = vmul.f32 %v1245_v59, %v1236_v24  ;;  %v1299_v43 = vperm.slane %v2272_v47, 3 }
 0x2d2   : > { %v1304_v60 = vmul.f32 %v1296_v55, %v1289_v38  ;;  %v1305_v11 = vmul.f32 %v1297_v23, %v1287_v4  ;;  %v1254_v38 = vmul.f32 %v1246_v10, %v1233_v37 }
 0x2d4   : > { %v1312_v8 = vadd.f32 %v1304_v60, %v1260_v1  ;;  %v1313_v58 = vadd.f32 %v1305_v11, %v1261_v50 }
 0x2d7   : > { %v1275_v49 = vpop.permute.xlu1 %1274 }
 0x2d8   : > { %v1231_v51 = vpop.permute.xlu0 %1230  ;;  %v1283_v63 = vpop.permute.xlu2 %1282  ;;  %v1290_v32 = vsel %vm1284_vm8, %v2262_v42, %v1275_v49 }
 0x2d9   : > { %v1234_v17 = vsel %vm1232_vm7, %v1227_v31, %v1231_v51  ;;  %v1240_v34 = vsel %vm1232_vm7, %v1231_v51, %v1219_v21  ;;  %v1265_v31 = vadd.f32 %v1257_v30, %v1213_v36 }
 0x2da   : > { %v1258_v21 = vmul.f32 %v1246_v10, %v1234_v17  ;;  %v1259_v51 = vmul.f32 %v1247_v3, %v1240_v34  ;;  %v1410_v17 = vld [vmem:[%s1786_s19 + $0x20] sm:$0xff] (%p1752_p5)  ;;  %v1412_v34 = vld [vmem:[%s1786_s19 + $0x28] sm:$0xff] (%p1752_p5) }
 0x2db   : > { %1411 = vst [vmem:[%s1389_s9 + $0x40] sm:$0xff] (%p1752_p5), %v1410_v17 }
 0x2dc   : > { %v1267_v62 = vadd.f32 %v1259_v51, %v2258_v40  ;;  %1413 = vst [vmem:[%s1389_s9 + $0x48] sm:$0xff] (%p1752_p5), %v1412_v34 }
 0x2df   : > { %v1281_v61 = vpop.permute.xlu1 %1280 }
 0x2e0   : > { %v2289_v5 = vpop.permute.xlu0 %1320  ;;  %v1331_v53 = vpop.permute.xlu2 %1330 }
 0x2e1   : > { %v1341_v7 = vsel %vm1336_vm9, %v2289_v5, %v1325_v57 }
 0x2e2   : > { %v1356_v12 = vmul.f32 %v1348_v56, %v1341_v7 }
 0x2e4   : > { %v1364_v54 = vadd.f32 %v1356_v12, %v1312_v8  ;;  %v1285_v8 = vsel %vm1284_vm8, %v2264_v45, %v1281_v61  ;;  %v1291_v12 = vsel %vm1284_vm8, %v1281_v61, %v2260_v41 }
 0x2e5   : > { %v1306_v13 = vmul.f32 %v1298_v44, %v1285_v8  ;;  %v1307_v45 = vmul.f32 %v1299_v43, %v1291_v12 }
 0x2e6   : > { %1372 = vst [vmem:[%s1786_s19 + $0x40] sm:$0xff] %v1364_v54 }
 0x2e7   : > { %v2304_v18 = vpop.permute.xlu1 %1322  ;;  %v1315_v27 = vadd.f32 %v1307_v45, %v2254_v33  ;;  %v1404_v33 = vld [vmem:[%s1786_s19 + $0x8] sm:$0xff] (%p1752_p5) }
 0x2e8   : > { %v1279_v25 = vpop.permute.xlu0 %1278  ;;  %1405 = vst [vmem:[%s1389_s9 + $0x8] sm:$0xff] (%p1752_p5), %v1404_v33 }
 0x2e9   : > { %v1288_v6 = vsel %vm1284_vm8, %v1275_v49, %v1279_v25  ;;  %v1308_v49 = vmul.f32 %v1296_v55, %v1290_v32  ;;  %v1286_v47 = vsel %vm1284_vm8, %v1279_v25, %v1283_v63 }
 0x2ea   : > { %v1309_v52 = vmul.f32 %v1297_v23, %v1288_v6  ;;  %v1310_v59 = vmul.f32 %v1298_v44, %v1286_v47  ;;  %v1262_v23 = vadd.f32 %v1254_v38, %v2250_v29 }
 0x2eb   : > { %v1316_v1 = vadd.f32 %v1308_v49, %v1264_v35 }
 0x2ec   : > { %v1317_v7 = vadd.f32 %v1309_v52, %v1265_v31  ;;  %v1314_v26 = vadd.f32 %v1306_v13, %v1262_v23 }
 0x2ed   : > { %v1418_v50 = vld [vmem:[%s1786_s19 + $0x40] sm:$0xff] (%p1752_p5) }
 0x2ee   : > { %1419 = vst [vmem:[%s1389_s9 + $0x80] sm:$0xff] (%p1752_p5), %v1418_v50 }
 0x2ef   : > { %v1329_v39 = vpop.permute.xlu1 %1328 }
 0x2f0   : > { %v1327_v60 = vpop.permute.xlu0 %1326  ;;  %v1339_v14 = vsel %vm1336_vm9, %v1325_v57, %v1329_v39  ;;  %v1292_v57 = vsel %vm1284_vm8, %v1283_v63, %v2262_v42  ;;  %v1351_v42 = vperm.slane %v2285_v28, 3  ;;  %v1266_v63 = vadd.f32 %v1258_v21, %v1214_v22 }
 0x2f1   : > { %v1340_v2 = vsel %vm1336_vm9, %v1327_v60, %v1331_v53  ;;  %v1342_v15 = vsel %vm1336_vm9, %v2304_v18, %v1327_v60  ;;  %v1357_v55 = vmul.f32 %v1349_v46, %v1339_v14  ;;  %v1311_v9 = vmul.f32 %v1299_v43, %v1292_v57  ;;  %v1414_v43 = vld [vmem:[%s1786_s19 + $0x30] sm:$0xff] (%p1752_p5) }
 0x2f2   : > { %v1360_v16 = vmul.f32 %v1348_v56, %v1342_v15  ;;  %v1361_v3 = vmul.f32 %v1349_v46, %v1340_v2  ;;  %v1318_v24 = vadd.f32 %v1310_v59, %v1266_v63  ;;  %v1416_v46 = vld [vmem:[%s1786_s19 + $0x38] sm:$0xff] (%p1752_p5)  ;;  %1415 = vst [vmem:[%s1389_s9 + $0x50] sm:$0xff] (%p1752_p5), %v1414_v43 }
 0x2f3   : > { %v1365_v54 = vadd.f32 %v1357_v55, %v1313_v58  ;;  %v1319_v61 = vadd.f32 %v1311_v9, %v1267_v62  ;;  %1417 = vst [vmem:[%s1389_s9 + $0x58] sm:$0xff] (%p1752_p5), %v1416_v46 }
 0x2f4   : > { %v1368_v56 = vadd.f32 %v1360_v16, %v1316_v1  ;;  %v1369_v48 = vadd.f32 %v1361_v3, %v1317_v7 }
 0x2f5   : > { %1373 = vst [vmem:[%s1786_s19 + $0x48] sm:$0xff] %v1365_v54 }
 0x2f6   : > { %1376 = vst [vmem:[%s1786_s19 + $0x60] sm:$0xf] %v1368_v56 }
 0x2f7   : > { %1377 = vst [vmem:[%s1786_s19 + $0x68] sm:$0xf] %v1369_v48  ;;  %v1335_v41 = vpop.permute.xlu1 %1334 }
 0x2f8   : > { %v1333_v40 = vpop.permute.xlu0 %1332  ;;  %v1338_v25 = vsel %vm1336_vm9, %v1331_v53, %v1335_v41  ;;  %v1344_v28 = vsel %vm1336_vm9, %v1335_v41, %v2304_v18  ;;  %v1408_v18 = vld [vmem:[%s1786_s19 + $0x18] sm:$0xff] (%p1752_p5) }
 0x2f9   : > { %v1337_v4 = vsel %vm1336_vm9, %v1329_v39, %v1333_v40  ;;  %v1343_v29 = vsel %vm1336_vm9, %v1333_v40, %v2289_v5  ;;  %v1362_v20 = vmul.f32 %v1350_v0, %v1338_v25  ;;  %v1363_v10 = vmul.f32 %v1351_v42, %v1344_v28  ;;  %v1406_v5 = vld [vmem:[%s1786_s19 + $0x10] sm:$0xff] (%p1752_p5)  ;;  %1409 = vst [vmem:[%s1389_s9 + $0x18] sm:$0xff] (%p1752_p5), %v1408_v18 }
 0x2fa   : > { %v1358_v30 = vmul.f32 %v1350_v0, %v1337_v4  ;;  %v1359_v32 = vmul.f32 %v1351_v42, %v1343_v29  ;;  %1407 = vst [vmem:[%s1389_s9 + $0x10] sm:$0xff] (%p1752_p5), %v1406_v5 }
 0x2fb   : > { %v1370_v6 = vadd.f32 %v1362_v20, %v1318_v24  ;;  %v1371_v11 = vadd.f32 %v1363_v10, %v1319_v61 }
 0x2fc   : > { %v1366_v36 = vadd.f32 %v1358_v30, %v1314_v26  ;;  %v1367_v37 = vadd.f32 %v1359_v32, %v1315_v27  ;;  %1386 = sbr.rel (!%p1752_p5) target bundleno = 777 (0x309), region = 75  ;;  %v1420_v49 = vld [vmem:[%s1786_s19 + $0x48] sm:$0xff] (%p1752_p5) }
 0x2fd   : > { %1378 = vst [vmem:[%s1786_s19 + $0x70] sm:$0xf] %v1370_v6  ;;  %v1426_v53 = vld [vmem:[%s1786_s19 + $0x60] sm:$0xff] (%p1752_p5) }
 0x2fe   : > { %1374 = vst [vmem:[%s1786_s19 + $0x50] sm:$0xff] %v1366_v36  ;;  %v1428_v22 = vld [vmem:[%s1786_s19 + $0x68] sm:$0xff] (%p1752_p5) }
 0x2ff   : > { %1375 = vst [vmem:[%s1786_s19 + $0x58] sm:$0xff] %v1367_v37 }
 0x300   : > { %1379 = vst [vmem:[%s1786_s19 + $0x78] sm:$0xf] %v1371_v11 }
 0x301   : > { %1421 = vst [vmem:[%s1389_s9 + $0x88] sm:$0xff] %v1420_v49 }
 0x302   : > { %1427 = vst [vmem:[%s1389_s9 + $0xc0] sm:$0xff] %v1426_v53 }
 0x303   : > { %1429 = vst [vmem:[%s1389_s9 + $0xc8] sm:$0xff] %v1428_v22 }
 0x304   : > { %v1430_v35 = vld [vmem:[%s1786_s19 + $0x70] sm:$0xff] }
 0x305   : > { %v1422_v44 = vld [vmem:[%s1786_s19 + $0x50] sm:$0xff]  ;;  %1431 = vst [vmem:[%s1389_s9 + $0xd0] sm:$0xff] %v1430_v35 }
 0x306   : > { %v1424_v52 = vld [vmem:[%s1786_s19 + $0x58] sm:$0xff]  ;;  %1423 = vst [vmem:[%s1389_s9 + $0x90] sm:$0xff] %v1422_v44 }
 0x307   : > { %1425 = vst [vmem:[%s1389_s9 + $0x98] sm:$0xff] %v1424_v52  ;;  %v1432_v38 = vld [vmem:[%s1786_s19 + $0x78] sm:$0xff] }
 0x308   : > { %1433 = vst [vmem:[%s1389_s9 + $0xd8] sm:$0xff] %v1432_v38 }
 0x309 PF: > { %p14_p10 = scmp.ge.s32.totalorder %s1739_s28, 4   ;;  %s2424_s24 = smov %s1667_s25 }
 0x30a   : > { %s2425_s25 = smov %s1750_s8  ;;  %s2426_s26 = smov %s1739_s28 }
 0x30b   :  { %16 = sbr.rel (!%p14_p10) target bundleno = 2 (0x2), region = 136 }

</bundles_post_ra>
